<compile_context>
chip_gen: v5e
topology: v5e:2x2
jax: 0.10.0
libtpu: 0.0.40
codegen_flags: <defaults>
</compile_context>

<pallas_src>
import functools

import jax
import jax.numpy as jnp
from jax.experimental import pallas as pl
from jax.experimental.pallas import tpu as pltpu

LANE = 128


def _round_up(x, m):
    return (x + m - 1) // m * m


# ----------------------------------------------------------------------------
# Fused Pallas kernel: whole JasperBlock for one (batch, time-tile) grid step.
# ----------------------------------------------------------------------------
def _jasper_block_kernel(x_hbm_ref, *refs, K, repeat, tile_t, halo, t_valid):
    conv_refs = refs[:3 * repeat]                      # (w, scale, shift) x repeat
    wr_ref, sr_ref, br_ref = refs[3 * repeat:3 * repeat + 3]
    o_ref = refs[3 * repeat + 3]
    xbuf_ref, dma_sem = refs[3 * repeat + 4:]

    n = pl.program_id(0)
    ti = pl.program_id(1)
    p = K // 2
    win = tile_t + 2 * halo
    t0 = pl.multiple_of(ti * tile_t, tile_t)           # start in padded time coords

    # Manual halo'd load: TILE_T rows + `halo` context rows on each side.
    # TODO(synk): double-buffer this copy across grid steps to hide DMA latency.
    cp = pltpu.make_async_copy(
        x_hbm_ref.at[pl.ds(n, 1), pl.ds(t0, win), :], xbuf_ref, dma_sem)
    cp.start()
    cp.wait()

    h = xbuf_ref[0]                                    # (win, cin_pad), compute dtype
    cur = win
    y = None
    for i in range(repeat):
        w_ref, s_ref, b_ref = conv_refs[3 * i:3 * i + 3]
        wout = cur - (K - 1)
        # im2col: single (wout, K*Cin) @ (K*Cin, Cout) MXU matmul per sub-block.
        cols = jnp.concatenate([h[k:k + wout, :] for k in range(K)], axis=1)
        acc = jnp.dot(cols, w_ref[...], preferred_element_type=jnp.float32)
        acc = acc * s_ref[...] + b_ref[...]            # folded BatchNorm (eval)
        if i < repeat - 1:
            act = jnp.clip(acc, 0.0, 20.0)             # Hardtanh(0,20); Dropout(p=0)
            # Zero rows outside the real sequence so the next conv sees the same
            # per-layer zero 'same' padding PyTorch applies.
            pos = (jax.lax.broadcasted_iota(jnp.int32, (wout, 1), 0)
                   + t0 - (repeat - 1 - i) * p)
            valid = jnp.logical_and(pos >= 0, pos < t_valid)
            h = jnp.where(valid, act, 0.0).astype(h.dtype)
            cur = wout
        else:
            y = acc                                    # (tile_t, cout_pad), f32

    # Residual branch: 1x1 conv + folded BN on this tile's original input rows,
    # accumulated in f32 before the single Hardtanh (same MXU stream, no extra
    # VMEM round trip).
    xs = xbuf_ref[0, halo:halo + tile_t, :]
    res = jnp.dot(xs, wr_ref[...], preferred_element_type=jnp.float32)
    res = res * sr_ref[...] + br_ref[...]

    out = jnp.clip(y + res, 0.0, 20.0)                 # residual add + Hardtanh
    o_ref[...] = out.reshape(o_ref.shape).astype(o_ref.dtype)


# ----------------------------------------------------------------------------
# Wrapper
# ----------------------------------------------------------------------------
def jasper_block_forward(x_nct, lens, kparams, *, K, tile_t=128):
    """Mirrors JasperBlock.forward((x, lens)) for the default (inference)
    config with conv_mask=False.  Returns (out_nct, lens); lens is unchanged
    because no MaskedConv1d is active in this configuration."""
    N, Cin, T = x_nct.shape
    repeat = len(kparams["convs"])
    cin_pad = kparams["cin_pad"]
    cout_pad = kparams["cout_pad"]
    cout = kparams["cout"]
    compute_dtype = kparams["convs"][0][0].dtype
    assert K % 2 == 1, "same-padding math assumes odd kernel size"
    assert tile_t % 8 == 0

    p = K // 2
    halo = repeat * p
    tile_t = min(tile_t, _round_up(T, 8))
    t_pad = _round_up(T, tile_t)
    n_t = t_pad // tile_t
    win = tile_t + 2 * halo

    # NCT -> NTC, lane-pad channels to 128, halo/tile-pad time, cast to the
    # MXU compute dtype.  XLA fuses this into a single prologue pass over x.
    x_ntc = jnp.transpose(x_nct, (0, 2, 1))
    x_ntc = jnp.pad(
        x_ntc, ((0, 0), (halo, halo + t_pad - T), (0, cin_pad - Cin)))
    x_ntc = x_ntc.astype(compute_dtype)

    args, specs = [], []
    for (w, s, b) in kparams["convs"] + [kparams["res"]]:
        args += [w, s, b]
        specs += [pl.BlockSpec(w.shape, lambda n, t: (0, 0)),   # resident weights
                  pl.BlockSpec(s.shape, lambda n, t: (0, 0)),
                  pl.BlockSpec(b.shape, lambda n, t: (0, 0))]

    # TODO(synk): for v7x-scale channel counts (e.g. 1024) add a Cout grid axis
    # so only a (K*Cin, TILE_COUT) weight slice is resident in 64 MiB VMEM.
    out = pl.pallas_call(
        functools.partial(_jasper_block_kernel, K=K, repeat=repeat,
                          tile_t=tile_t, halo=halo, t_valid=T),
        out_shape=jax.ShapeDtypeStruct((N, t_pad, cout_pad), compute_dtype),
        grid=(N, n_t),
        in_specs=[pl.BlockSpec(memory_space=pl.ANY)] + specs,
        out_specs=pl.BlockSpec((1, tile_t, cout_pad), lambda n, t: (n, t, 0)),
        scratch_shapes=[pltpu.VMEM((1, win, cin_pad), compute_dtype),
                        pltpu.SemaphoreType.DMA],
        compiler_params=pltpu.CompilerParams(
            dimension_semantics=("parallel", "parallel")),
    )(x_ntc, *args)

    out = out[:, :T, :cout]                            # drop tile/lane padding
    return jnp.transpose(out, (0, 2, 1)).astype(x_nct.dtype), lens


# ----------------------------------------------------------------------------
# Deterministic synthetic parameters + pure-JAX reference for verification
# ----------------------------------------------------------------------------
def make_params(key, inplanes, planes, K, repeat):
    """Synthetic torch-layout parameters: Conv1d weight (O, I, K) + BN stats."""
    def conv_bn(key, cin, cout, k):
        kw, kg, kb, km, kv = jax.random.split(key, 5)
        w = 0.1 * jax.random.normal(kw, (cout, cin, k), jnp.float32)
        gamma = 1.0 + 0.1 * jax.random.normal(kg, (cout,), jnp.float32)
        beta = 0.1 * jax.random.normal(kb, (cout,), jnp.float32)
        rmean = 0.1 * jax.random.normal(km, (cout,), jnp.float32)
        rvar = jax.random.uniform(kv, (cout,), jnp.float32, 0.5, 1.5)
        return (w, gamma, beta, rmean, rvar)

    keys = jax.random.split(key, repeat + 1)
    convs = []
    cin = inplanes
    for i in range(repeat):
        convs.append(conv_bn(keys[i], cin, planes, K))
        cin = planes
    res = conv_bn(keys[repeat], inplanes, planes, 1)
    return {"convs": convs, "res": res}


def fold_params(params, eps=1e-3, compute_dtype=jnp.float32):
    """Fold eval-mode BatchNorm into scale/shift, lane-pad channels to 128,
    flatten conv weights to the (K*Cin_pad, Cout_pad) im2col layout and cast
    weights to the MXU compute dtype (scale/shift stay f32)."""
    convs = params["convs"]
    cin0 = convs[0][0].shape[1]
    cout = convs[0][0].shape[0]
    cin_pad = _round_up(cin0, LANE)
    cout_pad = _round_up(cout, LANE)

    def fold(w, gamma, beta, rmean, rvar, cin_p):
        co, ci, k = w.shape
        scale = gamma / jnp.sqrt(rvar + eps)
        shift = beta - rmean * scale
        w_kio = jnp.transpose(w, (2, 1, 0))                       # (K, Cin, Cout)
        w_kio = jnp.pad(w_kio, ((0, 0), (0, cin_p - ci), (0, cout_pad - co)))
        w_flat = w_kio.reshape(k * cin_p, cout_pad).astype(compute_dtype)
        scale = jnp.pad(scale, (0, cout_pad - co)).reshape(1, -1).astype(jnp.float32)
        shift = jnp.pad(shift, (0, cout_pad - co)).reshape(1, -1).astype(jnp.float32)
        return (w_flat, scale, shift)

    folded = []
    cin_p = cin_pad
    for prm in convs:
        folded.append(fold(*prm, cin_p))
        cin_p = cout_pad
    res = fold(*params["res"], cin_pad)
    return {"convs": folded, "res": res, "cin": cin0, "cout": cout,
            "cin_pad": cin_pad, "cout_pad": cout_pad}


def reference_forward(x_nct, params, K, eps=1e-3):
    def conv1d(x, w, pad):
        return jax.lax.conv_general_dilated(
            x, w, window_strides=(1,), padding=[(pad, pad)],
            dimension_numbers=("NCH", "OIH", "NCH"))

    def bn(x, gamma, beta, rmean, rvar):
        inv = 1.0 / jnp.sqrt(rvar + eps)
        return ((x - rmean[None, :, None]) * inv[None, :, None]
                * gamma[None, :, None] + beta[None, :, None])

    out = x_nct
    convs = params["convs"]
    for i, (w, g, b, rm, rv) in enumerate(convs):
        out = bn(conv1d(out, w, K // 2), g, b, rm, rv)
        if i < len(convs) - 1:
            out = jnp.clip(out, 0.0, 20.0)
    wr, g, b, rm, rv = params["res"]
    res = bn(conv1d(x_nct, wr, 0), g, b, rm, rv)
    return jnp.clip(out + res, 0.0, 20.0)


# ----------------------------------------------------------------------------
# TODO(synk): training-mode BatchNorm statistics, nonzero-p Dropout (torch RNG
# semantics) and the conv_mask=True / grouped / separable variants are not
# reproduced — this kernel implements the default inference configuration.
if __name__ == "__main__":
    N, INPLANES, PLANES, T = 2, 16, 32, 20
    KERNEL_SIZE, REPEAT = 5, 3          # compute_new_kernel_size(5, 1.0) == 5
    TILE_T = 8                          # small tile -> exercises halo + multi-tile path

    root = jax.random.PRNGKey(0)
    k_x, k_p = jax.random.split(root)
    x_nct = jax.random.normal(k_x, (N, INPLANES, T), jnp.float32)   # PyTorch NCT
    lens = jnp.full((N,), T, jnp.int32)
    params = make_params(k_p, INPLANES, PLANES, KERNEL_SIZE, REPEAT)

    ref = reference_forward(x_nct, params, KERNEL_SIZE)

    # f32 compute path: tight tolerance against the pure-JAX reference.
    kparams = fold_params(params, compute_dtype=jnp.float32)
    out, lens_out = jasper_block_forward(x_nct, lens, kparams,
                                         K=KERNEL_SIZE, tile_t=TILE_T)
    out = jax.block_until_ready(out)
    assert out.shape == ref.shape == (N, PLANES, T), (out.shape, ref.shape)
    assert lens_out.shape == lens.shape
    if not jnp.allclose(out, ref, atol=1e-3, rtol=1e-3):
        raise AssertionError(
            f"f32 mismatch: max abs diff = {jnp.max(jnp.abs(out - ref))}")

    # bf16 MXU path (f32 accumulation): loose tolerance.
    kparams_bf16 = fold_params(params, compute_dtype=jnp.bfloat16)
    out16, _ = jasper_block_forward(x_nct, lens, kparams_bf16,
                                    K=KERNEL_SIZE, tile_t=TILE_T)
    out16 = jax.block_until_ready(out16)
    err16 = float(jnp.max(jnp.abs(out16.astype(jnp.float32) - ref)))
    if err16 > 0.5:
        raise AssertionError(f"bf16 mismatch: max abs diff = {err16}")

    print("KERNEL_OK")
</pallas_src>

<mosaic_0001>
module attributes {stable_mosaic.version = 11 : i64} {
  func.func @_jasper_block_kernel(%arg0: i32, %arg1: i32, %arg2: memref<2x36x128xf32, #tpu.memory_space<any>>, %arg3: memref<640x128xf32, #tpu.memory_space<vmem>>, %arg4: memref<1x128xf32, #tpu.memory_space<vmem>>, %arg5: memref<1x128xf32, #tpu.memory_space<vmem>>, %arg6: memref<640x128xf32, #tpu.memory_space<vmem>>, %arg7: memref<1x128xf32, #tpu.memory_space<vmem>>, %arg8: memref<1x128xf32, #tpu.memory_space<vmem>>, %arg9: memref<640x128xf32, #tpu.memory_space<vmem>>, %arg10: memref<1x128xf32, #tpu.memory_space<vmem>>, %arg11: memref<1x128xf32, #tpu.memory_space<vmem>>, %arg12: memref<128x128xf32, #tpu.memory_space<vmem>>, %arg13: memref<1x128xf32, #tpu.memory_space<vmem>>, %arg14: memref<1x128xf32, #tpu.memory_space<vmem>>, %arg15: memref<1x8x128xf32, #tpu.memory_space<vmem>>, %arg16: memref<1x20x128xf32, #tpu.memory_space<vmem>>, %arg17: memref<!tpu.dma_semaphore, #tpu.memory_space<semaphore_mem>>) attributes {dimension_semantics = [#tpu.dimension_semantics<parallel>, #tpu.dimension_semantics<parallel>], iteration_bounds = array<i64: 2, 3>, scalar_prefetch = 0 : i64, scratch_operands = 2 : i64, tpu.core_type = #tpu.core_type<tc>, window_params = [{}, {pipeline_mode = #tpu.pipeline_mode<synchronous>, transform_indices = @transform_1, window_bounds = array<i64: 640, 128>}, {pipeline_mode = #tpu.pipeline_mode<synchronous>, transform_indices = @transform_2, window_bounds = array<i64: 1, 128>}, {pipeline_mode = #tpu.pipeline_mode<synchronous>, transform_indices = @transform_3, window_bounds = array<i64: 1, 128>}, {pipeline_mode = #tpu.pipeline_mode<synchronous>, transform_indices = @transform_4, window_bounds = array<i64: 640, 128>}, {pipeline_mode = #tpu.pipeline_mode<synchronous>, transform_indices = @transform_5, window_bounds = array<i64: 1, 128>}, {pipeline_mode = #tpu.pipeline_mode<synchronous>, transform_indices = @transform_6, window_bounds = array<i64: 1, 128>}, {pipeline_mode = #tpu.pipeline_mode<synchronous>, transform_indices = @transform_7, window_bounds = array<i64: 640, 128>}, {pipeline_mode = #tpu.pipeline_mode<synchronous>, transform_indices = @transform_8, window_bounds = array<i64: 1, 128>}, {pipeline_mode = #tpu.pipeline_mode<synchronous>, transform_indices = @transform_9, window_bounds = array<i64: 1, 128>}, {pipeline_mode = #tpu.pipeline_mode<synchronous>, transform_indices = @transform_10, window_bounds = array<i64: 128, 128>}, {pipeline_mode = #tpu.pipeline_mode<synchronous>, transform_indices = @transform_11, window_bounds = array<i64: 1, 128>}, {pipeline_mode = #tpu.pipeline_mode<synchronous>, transform_indices = @transform_12, window_bounds = array<i64: 1, 128>}, {transform_indices = @transform_13, window_bounds = array<i64: 1, 8, 128>}]} {
    %c8_i32 = arith.constant 8 : i32
    %0 = arith.muli %arg1, %c8_i32 : i32
    %1 = tpu.assume_multiple %0, 8 : i32
    %c0_i32 = arith.constant 0 : i32
    %2 = tpu.memref_slice %arg2[%arg0, %1, %c0_i32] : memref<2x36x128xf32, #tpu.memory_space<any>> -> memref<1x20x128xf32, #tpu.memory_space<any>>
    tpu.enqueue_dma source(%2 : memref<1x20x128xf32, #tpu.memory_space<any>>) target(%arg16 : memref<1x20x128xf32, #tpu.memory_space<vmem>>) target_semaphore(%arg17 : memref<!tpu.dma_semaphore, #tpu.memory_space<semaphore_mem>>)
    %c0_i32_0 = arith.constant 0 : i32
    %3 = tpu.memref_slice %arg2[%arg0, %1, %c0_i32_0] : memref<2x36x128xf32, #tpu.memory_space<any>> -> memref<1x20x128xf32, #tpu.memory_space<any>>
    tpu.wait_dma2 semaphore(%arg17 : memref<!tpu.dma_semaphore, #tpu.memory_space<semaphore_mem>>) src(%3 : memref<1x20x128xf32, #tpu.memory_space<any>>) dst(%arg16 : memref<1x20x128xf32, #tpu.memory_space<vmem>>)
    %c0 = arith.constant 0 : index
    %c0_1 = arith.constant 0 : index
    %c0_2 = arith.constant 0 : index
    %4 = vector.load %arg16[%c0, %c0_1, %c0_2] : memref<1x20x128xf32, #tpu.memory_space<vmem>>, vector<1x20x128xf32>
    %5 = vector.shape_cast %4 : vector<1x20x128xf32> to vector<20x128xf32>
    %6 = vector.extract_strided_slice %5 {offsets = [0, 0], sizes = [16, 128], strides = [1, 1]} : vector<20x128xf32> to vector<16x128xf32>
    %7 = vector.extract_strided_slice %5 {offsets = [1, 0], sizes = [16, 128], strides = [1, 1]} : vector<20x128xf32> to vector<16x128xf32>
    %8 = vector.extract_strided_slice %5 {offsets = [2, 0], sizes = [16, 128], strides = [1, 1]} : vector<20x128xf32> to vector<16x128xf32>
    %9 = vector.extract_strided_slice %5 {offsets = [3, 0], sizes = [16, 128], strides = [1, 1]} : vector<20x128xf32> to vector<16x128xf32>
    %10 = vector.extract_strided_slice %5 {offsets = [4, 0], sizes = [16, 128], strides = [1, 1]} : vector<20x128xf32> to vector<16x128xf32>
    %11 = tpu.concatenate %6, %7, %8, %9, %10 in 1 : vector<16x128xf32>, vector<16x128xf32>, vector<16x128xf32>, vector<16x128xf32>, vector<16x128xf32> -> vector<16x640xf32>
    %c0_3 = arith.constant 0 : index
    %c0_4 = arith.constant 0 : index
    %12 = vector.load %arg3[%c0_3, %c0_4] : memref<640x128xf32, #tpu.memory_space<vmem>>, vector<640x128xf32>
    %cst = arith.constant dense<0.000000e+00> : vector<16x128xf32>
    %13 = tpu.matmul %11, %12, %cst {dimension_numbers = #tpu.dot_dimension_numbers<[1], [0], [0], [1], [0, 0, 1, 1], [], []>} : vector<16x640xf32>, vector<640x128xf32>, vector<16x128xf32> -> vector<16x128xf32>
    %c0_5 = arith.constant 0 : index
    %c0_6 = arith.constant 0 : index
    %14 = vector.load %arg4[%c0_5, %c0_6] : memref<1x128xf32, #tpu.memory_space<vmem>>, vector<1x128xf32>
    %15 = vector.broadcast %14 : vector<1x128xf32> to vector<16x128xf32>
    %16 = arith.mulf %13, %15 : vector<16x128xf32>
    %c0_7 = arith.constant 0 : index
    %c0_8 = arith.constant 0 : index
    %17 = vector.load %arg5[%c0_7, %c0_8] : memref<1x128xf32, #tpu.memory_space<vmem>>, vector<1x128xf32>
    %18 = vector.broadcast %17 : vector<1x128xf32> to vector<16x128xf32>
    %19 = arith.addf %16, %18 : vector<16x128xf32>
    %cst_9 = arith.constant 0.000000e+00 : f32
    %cst_10 = arith.constant 2.000000e+01 : f32
    %20 = vector.broadcast %cst_9 : f32 to vector<16x128xf32>
    %21 = arith.maximumf %20, %19 : vector<16x128xf32>
    %22 = vector.broadcast %cst_10 : f32 to vector<16x128xf32>
    %23 = arith.minimumf %22, %21 : vector<16x128xf32>
    %24 = tpu.iota {dimensions = array<i32: 0>} : vector<16x1xi32>
    %25 = vector.broadcast %1 : i32 to vector<16x1xi32>
    %26 = arith.addi %24, %25 : vector<16x1xi32>
    %c4_i32 = arith.constant 4 : i32
    %27 = vector.broadcast %c4_i32 : i32 to vector<16x1xi32>
    %28 = arith.subi %26, %27 : vector<16x1xi32>
    %c0_i32_11 = arith.constant 0 : i32
    %29 = vector.broadcast %c0_i32_11 : i32 to vector<16x1xi32>
    %30 = arith.cmpi sge, %28, %29 : vector<16x1xi32>
    %c20_i32 = arith.constant 20 : i32
    %31 = vector.broadcast %c20_i32 : i32 to vector<16x1xi32>
    %32 = arith.cmpi slt, %28, %31 : vector<16x1xi32>
    %33 = arith.andi %30, %32 : vector<16x1xi1>
    %cst_12 = arith.constant 0.000000e+00 : f32
    %34 = vector.shape_cast %33 : vector<16x1xi1> to vector<16x1xi1>
    %35 = vector.broadcast %34 : vector<16x1xi1> to vector<16x128xi1>
    %36 = vector.broadcast %cst_12 : f32 to vector<16x128xf32>
    %37 = arith.select %35, %23, %36 : vector<16x128xi1>, vector<16x128xf32>
    %38 = vector.extract_strided_slice %37 {offsets = [0, 0], sizes = [12, 128], strides = [1, 1]} : vector<16x128xf32> to vector<12x128xf32>
    %39 = vector.extract_strided_slice %37 {offsets = [1, 0], sizes = [12, 128], strides = [1, 1]} : vector<16x128xf32> to vector<12x128xf32>
    %40 = vector.extract_strided_slice %37 {offsets = [2, 0], sizes = [12, 128], strides = [1, 1]} : vector<16x128xf32> to vector<12x128xf32>
    %41 = vector.extract_strided_slice %37 {offsets = [3, 0], sizes = [12, 128], strides = [1, 1]} : vector<16x128xf32> to vector<12x128xf32>
    %42 = vector.extract_strided_slice %37 {offsets = [4, 0], sizes = [12, 128], strides = [1, 1]} : vector<16x128xf32> to vector<12x128xf32>
    %43 = tpu.concatenate %38, %39, %40, %41, %42 in 1 : vector<12x128xf32>, vector<12x128xf32>, vector<12x128xf32>, vector<12x128xf32>, vector<12x128xf32> -> vector<12x640xf32>
    %c0_13 = arith.constant 0 : index
    %c0_14 = arith.constant 0 : index
    %44 = vector.load %arg6[%c0_13, %c0_14] : memref<640x128xf32, #tpu.memory_space<vmem>>, vector<640x128xf32>
    %cst_15 = arith.constant dense<0.000000e+00> : vector<12x128xf32>
    %45 = tpu.matmul %43, %44, %cst_15 {dimension_numbers = #tpu.dot_dimension_numbers<[1], [0], [0], [1], [0, 0, 1, 1], [], []>} : vector<12x640xf32>, vector<640x128xf32>, vector<12x128xf32> -> vector<12x128xf32>
    %c0_16 = arith.constant 0 : index
    %c0_17 = arith.constant 0 : index
    %46 = vector.load %arg7[%c0_16, %c0_17] : memref<1x128xf32, #tpu.memory_space<vmem>>, vector<1x128xf32>
    %47 = vector.broadcast %46 : vector<1x128xf32> to vector<12x128xf32>
    %48 = arith.mulf %45, %47 : vector<12x128xf32>
    %c0_18 = arith.constant 0 : index
    %c0_19 = arith.constant 0 : index
    %49 = vector.load %arg8[%c0_18, %c0_19] : memref<1x128xf32, #tpu.memory_space<vmem>>, vector<1x128xf32>
    %50 = vector.broadcast %49 : vector<1x128xf32> to vector<12x128xf32>
    %51 = arith.addf %48, %50 : vector<12x128xf32>
    %cst_20 = arith.constant 0.000000e+00 : f32
    %cst_21 = arith.constant 2.000000e+01 : f32
    %52 = vector.broadcast %cst_20 : f32 to vector<12x128xf32>
    %53 = arith.maximumf %52, %51 : vector<12x128xf32>
    %54 = vector.broadcast %cst_21 : f32 to vector<12x128xf32>
    %55 = arith.minimumf %54, %53 : vector<12x128xf32>
    %56 = tpu.iota {dimensions = array<i32: 0>} : vector<12x1xi32>
    %57 = vector.broadcast %1 : i32 to vector<12x1xi32>
    %58 = arith.addi %56, %57 : vector<12x1xi32>
    %c2_i32 = arith.constant 2 : i32
    %59 = vector.broadcast %c2_i32 : i32 to vector<12x1xi32>
    %60 = arith.subi %58, %59 : vector<12x1xi32>
    %c0_i32_22 = arith.constant 0 : i32
    %61 = vector.broadcast %c0_i32_22 : i32 to vector<12x1xi32>
    %62 = arith.cmpi sge, %60, %61 : vector<12x1xi32>
    %c20_i32_23 = arith.constant 20 : i32
    %63 = vector.broadcast %c20_i32_23 : i32 to vector<12x1xi32>
    %64 = arith.cmpi slt, %60, %63 : vector<12x1xi32>
    %65 = arith.andi %62, %64 : vector<12x1xi1>
    %cst_24 = arith.constant 0.000000e+00 : f32
    %66 = vector.shape_cast %65 : vector<12x1xi1> to vector<12x1xi1>
    %67 = vector.broadcast %66 : vector<12x1xi1> to vector<12x128xi1>
    %68 = vector.broadcast %cst_24 : f32 to vector<12x128xf32>
    %69 = arith.select %67, %55, %68 : vector<12x128xi1>, vector<12x128xf32>
    %70 = vector.extract_strided_slice %69 {offsets = [0, 0], sizes = [8, 128], strides = [1, 1]} : vector<12x128xf32> to vector<8x128xf32>
    %71 = vector.extract_strided_slice %69 {offsets = [1, 0], sizes = [8, 128], strides = [1, 1]} : vector<12x128xf32> to vector<8x128xf32>
    %72 = vector.extract_strided_slice %69 {offsets = [2, 0], sizes = [8, 128], strides = [1, 1]} : vector<12x128xf32> to vector<8x128xf32>
    %73 = vector.extract_strided_slice %69 {offsets = [3, 0], sizes = [8, 128], strides = [1, 1]} : vector<12x128xf32> to vector<8x128xf32>
    %74 = vector.extract_strided_slice %69 {offsets = [4, 0], sizes = [8, 128], strides = [1, 1]} : vector<12x128xf32> to vector<8x128xf32>
    %75 = tpu.concatenate %70, %71, %72, %73, %74 in 1 : vector<8x128xf32>, vector<8x128xf32>, vector<8x128xf32>, vector<8x128xf32>, vector<8x128xf32> -> vector<8x640xf32>
    %c0_25 = arith.constant 0 : index
    %c0_26 = arith.constant 0 : index
    %76 = vector.load %arg9[%c0_25, %c0_26] : memref<640x128xf32, #tpu.memory_space<vmem>>, vector<640x128xf32>
    %cst_27 = arith.constant dense<0.000000e+00> : vector<8x128xf32>
    %77 = tpu.matmul %75, %76, %cst_27 {dimension_numbers = #tpu.dot_dimension_numbers<[1], [0], [0], [1], [0, 0, 1, 1], [], []>} : vector<8x640xf32>, vector<640x128xf32>, vector<8x128xf32> -> vector<8x128xf32>
    %c0_28 = arith.constant 0 : index
    %c0_29 = arith.constant 0 : index
    %78 = vector.load %arg10[%c0_28, %c0_29] : memref<1x128xf32, #tpu.memory_space<vmem>>, vector<1x128xf32>
    %79 = vector.broadcast %78 : vector<1x128xf32> to vector<8x128xf32>
    %80 = arith.mulf %77, %79 : vector<8x128xf32>
    %c0_30 = arith.constant 0 : index
    %c0_31 = arith.constant 0 : index
    %81 = vector.load %arg11[%c0_30, %c0_31] : memref<1x128xf32, #tpu.memory_space<vmem>>, vector<1x128xf32>
    %82 = vector.broadcast %81 : vector<1x128xf32> to vector<8x128xf32>
    %83 = arith.addf %80, %82 : vector<8x128xf32>
    %c0_32 = arith.constant 0 : index
    %c6 = arith.constant 6 : index
    %c0_33 = arith.constant 0 : index
    %84 = vector.load %arg16[%c0_32, %c6, %c0_33] : memref<1x20x128xf32, #tpu.memory_space<vmem>>, vector<1x8x128xf32>
    %85 = vector.shape_cast %84 : vector<1x8x128xf32> to vector<8x128xf32>
    %c0_34 = arith.constant 0 : index
    %c0_35 = arith.constant 0 : index
    %86 = vector.load %arg12[%c0_34, %c0_35] : memref<128x128xf32, #tpu.memory_space<vmem>>, vector<128x128xf32>
    %cst_36 = arith.constant dense<0.000000e+00> : vector<8x128xf32>
    %87 = tpu.matmul %85, %86, %cst_36 {dimension_numbers = #tpu.dot_dimension_numbers<[1], [0], [0], [1], [0, 0, 1, 1], [], []>} : vector<8x128xf32>, vector<128x128xf32>, vector<8x128xf32> -> vector<8x128xf32>
    %c0_37 = arith.constant 0 : index
    %c0_38 = arith.constant 0 : index
    %88 = vector.load %arg13[%c0_37, %c0_38] : memref<1x128xf32, #tpu.memory_space<vmem>>, vector<1x128xf32>
    %89 = vector.broadcast %88 : vector<1x128xf32> to vector<8x128xf32>
    %90 = arith.mulf %87, %89 : vector<8x128xf32>
    %c0_39 = arith.constant 0 : index
    %c0_40 = arith.constant 0 : index
    %91 = vector.load %arg14[%c0_39, %c0_40] : memref<1x128xf32, #tpu.memory_space<vmem>>, vector<1x128xf32>
    %92 = vector.broadcast %91 : vector<1x128xf32> to vector<8x128xf32>
    %93 = arith.addf %90, %92 : vector<8x128xf32>
    %94 = arith.addf %83, %93 : vector<8x128xf32>
    %cst_41 = arith.constant 0.000000e+00 : f32
    %cst_42 = arith.constant 2.000000e+01 : f32
    %95 = vector.broadcast %cst_41 : f32 to vector<8x128xf32>
    %96 = arith.maximumf %95, %94 : vector<8x128xf32>
    %97 = vector.broadcast %cst_42 : f32 to vector<8x128xf32>
    %98 = arith.minimumf %97, %96 : vector<8x128xf32>
    %99 = vector.shape_cast %98 : vector<8x128xf32> to vector<1x8x128xf32>
    %c0_43 = arith.constant 0 : index
    %c0_44 = arith.constant 0 : index
    %c0_45 = arith.constant 0 : index
    %100 = vector.load %arg15[%c0_43, %c0_44, %c0_45] : memref<1x8x128xf32, #tpu.memory_space<vmem>>, vector<1x8x128xf32>
    tpu.vector_store %arg15[%c0_43, %c0_44, %c0_45], %99 {strides = array<i32>} : memref<1x8x128xf32, #tpu.memory_space<vmem>>, vector<1x8x128xf32>,
    return
  }
  func.func @transform_1(%arg0: i32, %arg1: i32) -> (i32, i32) {
    %c0_i32 = arith.constant 0 : i32
    %c0_i32_0 = arith.constant 0 : i32
    %c0_i32_1 = arith.constant 0 : i32
    return %c0_i32, %c0_i32_0 : i32, i32
  }
  func.func @transform_2(%arg0: i32, %arg1: i32) -> (i32, i32) {
    %c0_i32 = arith.constant 0 : i32
    %c0_i32_0 = arith.constant 0 : i32
    %c0_i32_1 = arith.constant 0 : i32
    return %c0_i32, %c0_i32_0 : i32, i32
  }
  func.func @transform_3(%arg0: i32, %arg1: i32) -> (i32, i32) {
    %c0_i32 = arith.constant 0 : i32
    %c0_i32_0 = arith.constant 0 : i32
    %c0_i32_1 = arith.constant 0 : i32
    return %c0_i32, %c0_i32_0 : i32, i32
  }
  func.func @transform_4(%arg0: i32, %arg1: i32) -> (i32, i32) {
    %c0_i32 = arith.constant 0 : i32
    %c0_i32_0 = arith.constant 0 : i32
    %c0_i32_1 = arith.constant 0 : i32
    return %c0_i32, %c0_i32_0 : i32, i32
  }
  func.func @transform_5(%arg0: i32, %arg1: i32) -> (i32, i32) {
    %c0_i32 = arith.constant 0 : i32
    %c0_i32_0 = arith.constant 0 : i32
    %c0_i32_1 = arith.constant 0 : i32
    return %c0_i32, %c0_i32_0 : i32, i32
  }
  func.func @transform_6(%arg0: i32, %arg1: i32) -> (i32, i32) {
    %c0_i32 = arith.constant 0 : i32
    %c0_i32_0 = arith.constant 0 : i32
    %c0_i32_1 = arith.constant 0 : i32
    return %c0_i32, %c0_i32_0 : i32, i32
  }
  func.func @transform_7(%arg0: i32, %arg1: i32) -> (i32, i32) {
    %c0_i32 = arith.constant 0 : i32
    %c0_i32_0 = arith.constant 0 : i32
    %c0_i32_1 = arith.constant 0 : i32
    return %c0_i32, %c0_i32_0 : i32, i32
  }
  func.func @transform_8(%arg0: i32, %arg1: i32) -> (i32, i32) {
    %c0_i32 = arith.constant 0 : i32
    %c0_i32_0 = arith.constant 0 : i32
    %c0_i32_1 = arith.constant 0 : i32
    return %c0_i32, %c0_i32_0 : i32, i32
  }
  func.func @transform_9(%arg0: i32, %arg1: i32) -> (i32, i32) {
    %c0_i32 = arith.constant 0 : i32
    %c0_i32_0 = arith.constant 0 : i32
    %c0_i32_1 = arith.constant 0 : i32
    return %c0_i32, %c0_i32_0 : i32, i32
  }
  func.func @transform_10(%arg0: i32, %arg1: i32) -> (i32, i32) {
    %c0_i32 = arith.constant 0 : i32
    %c0_i32_0 = arith.constant 0 : i32
    %c0_i32_1 = arith.constant 0 : i32
    return %c0_i32, %c0_i32_0 : i32, i32
  }
  func.func @transform_11(%arg0: i32, %arg1: i32) -> (i32, i32) {
    %c0_i32 = arith.constant 0 : i32
    %c0_i32_0 = arith.constant 0 : i32
    %c0_i32_1 = arith.constant 0 : i32
    return %c0_i32, %c0_i32_0 : i32, i32
  }
  func.func @transform_12(%arg0: i32, %arg1: i32) -> (i32, i32) {
    %c0_i32 = arith.constant 0 : i32
    %c0_i32_0 = arith.constant 0 : i32
    %c0_i32_1 = arith.constant 0 : i32
    return %c0_i32, %c0_i32_0 : i32, i32
  }
  func.func @transform_13(%arg0: i32, %arg1: i32) -> (i32, i32, i32) {
    %c0_i32 = arith.constant 0 : i32
    %c0_i32_0 = arith.constant 0 : i32
    return %arg0, %arg1, %c0_i32 : i32, i32, i32
  }
}

</mosaic_0001>

<bundles_post_ra>
// kernel: tpu_custom_call.1
= control target key start
LH: loop header
LB: loop body
LE: loop exit
PB: predicated region body
PF: predicated region fallthrough
CT: control target
= control target key end

     0   :  { %s2111_s0 = inlined_call_operand.vmem [shape: f32[2,36,128], index: 0, kind: input, shape index: {}]   ;;  %s2112_s1 = inlined_call_operand.hbm [shape: f32[640,128], index: 1, kind: input, shape index: {}]   ;;  %s2113_s2 = inlined_call_operand.vmem [shape: f32[1,128], index: 2, kind: input, shape index: {}]   ;;  %s2114_s3 = inlined_call_operand.vmem [shape: f32[1,128], index: 3, kind: input, shape index: {}]   ;;  %s2115_s4 = inlined_call_operand.hbm [shape: f32[640,128], index: 4, kind: input, shape index: {}]   ;;  %s2116_s5 = inlined_call_operand.vmem [shape: f32[1,128], index: 5, kind: input, shape index: {}]   ;;  %s2117_s6 = inlined_call_operand.vmem [shape: f32[1,128], index: 6, kind: input, shape index: {}]   ;;  %s2118_s7 = inlined_call_operand.hbm [shape: f32[640,128], index: 7, kind: input, shape index: {}]   ;;  %s2119_s8 = inlined_call_operand.vmem [shape: f32[1,128], index: 8, kind: input, shape index: {}]   ;;  %s2120_s9 = inlined_call_operand.vmem [shape: f32[1,128], index: 9, kind: input, shape index: {}]   ;;  %s2121_s10 = inlined_call_operand.vmem [shape: f32[128,128], index: 10, kind: input, shape index: {}]   ;;  %s2122_s11 = inlined_call_operand.vmem [shape: f32[1,128], index: 11, kind: input, shape index: {}]   ;;  %s2123_s12 = inlined_call_operand.vmem [shape: f32[1,128], index: 12, kind: input, shape index: {}]   ;;  %s2124_s13 = inlined_call_operand.hbm [shape: f32[2,24,128], index: 13, kind: output, shape index: {}]  }
   0x1   :  { %2137 = sst [smem:[#allocation26_spill]] %s2115_s4 }
   0x2   :  { %2138 = sst [smem:[#allocation27_spill]] %s2123_s12 }
   0x3   :  { %2139 = sst [smem:[#allocation28_spill]] %s2124_s13 }
   0x4   :  { %18 = vsyncpa [#allocation5], 0 }
   0x5   :  { %19 = vsyncpa [#allocation8], 0 }
   0x6   :  { %20 = vsyncpa [#allocation6], 0 }
   0x7   :  { %22 = vsyncpa [#allocation6 + $0x1], 0  ;;  %s1808_s25 = smov 0   ;;  %s1810_s26 = smov 0  }
   0x8   :  { %s1812_s27 = smov 0   ;;  %s1814_s28 = smov 0  }
   0x9   :  { %s1816_s29 = smov 0   ;;  %s1818_s30 = smov 0  }
   0xa   :  { %s1820_s14 = smov 0   ;;  %s1822_s15 = smov 0  }
   0xb LB: > { %2140 = sst [smem:[#allocation16_spill]] %s1703_s25  ;;  %s1399_s16 = sadd.s32 4294967295, %s1731_s15   ;;  %s1731_s15 = sphi %s1822_s15, %s28_s15   ;;  %s1727_s14 = sphi %s1820_s14, %s2170_s14   ;;  %s1723_s30 = sphi %s1818_s30, %s2169_s30   ;;  %s1719_s29 = sphi %s1816_s29, %s2168_s29   ;;  %s1715_s28 = sphi %s1814_s28, %s2167_s28   ;;  %s1711_s27 = sphi %s1812_s27, %s2166_s27   ;;  %s1707_s26 = sphi %s1810_s26, %s2172_s26   ;;  %s1703_s25 = sphi %s1808_s25, %s2171_s25  }
   0xc   : > { %2141 = sst [smem:[#allocation17_spill]] %s1711_s27  ;;  %s1400_s17 = sadd.s32 4294967294, %s1731_s15  }
   0xd   : > { %2142 = sst [smem:[#allocation18_spill]] %s1723_s30  ;;  %s37_s18 = sadd.s32 1, %s1723_s30 }
   0xe   : > { %2143 = sst [smem:[#allocation19_spill]] %s1727_s14  ;;  %s40_s19 = sadd.s32 1, %s1727_s14 }
   0xf   : > { %2144 = sst [smem:[#allocation20_spill]] %s1731_s15  ;;  %p38_p0 = scmp.ge.s32.totalorder %s37_s18, 3 }
  0x10   : > { %s301_s20 = sadd.s32 1, %s1711_s27  ;;  %p311_p1 = scmp.ne.s32.totalorder %s1711_s27, %s1707_s26 }
  0x11   : > { %p312_p2 = scmp.eq.s32.totalorder %s1399_s16, 5  ;;  %s2174_s18 = smov (%p38_p0, %s37_s18), 0 }
  0x12   : > { %2145 = sst [smem:[#allocation21_spill]] %s2174_s18  ;;  %s2176_s19 = smov (!%p38_p0, %s40_s19), %s1727_s14 }
  0x13   : > { %s297_s21 = ssub.s32 %s1723_s30, %s2174_s18  ;;  %p1860_p3 = por %p312_p2, %p311_p1 }
  0x14   : > { %p42_p4 = scmp.ge.s32.totalorder %s2176_s19, 2  ;;  %p317_p5 = scmp.ne.s32.totalorder %s1707_s26, %s1703_s25 }
  0x15   : > { %s2146_s22 = scalar_select %p1860_p3, 1, 0 }
  0x16   : > { %p318_p6 = scmp.eq.s32.totalorder %s1400_s17, 5  ;;  %p1401_p7 = scmp.ge.s32.totalorder %s1731_s15, 1 }
  0x17   : > { %2147 = sst [smem:[#allocation22_spill]] %s2146_s22  ;;  %s2178_s19 = smov (%p42_p4, %s2176_s19), 0 }
  0x18   : > { %2148 = sst [smem:[#allocation23_spill]] %s2178_s19  ;;  %p1869_p8 = por %p318_p6, %p317_p5 }
  0x19   : > { %p325_p9 = scmp.lt.s32.totalorder %s1731_s15, 7  ;;  %s296_s24 = ssub.s32 %s1727_s14, %s2178_s19 }
  0x1a   : > { %s2149_s23 = scalar_select %p1869_p8, 1, 0 }
  0x1b   : > { %s298_s13 = sor.u32 %s297_s21, %s296_s24  ;;  %p1876_p10 = pnand %p1401_p7, %p325_p9 }
  0x1c   : > { %2150 = sst [smem:[#allocation24_spill]] %s2149_s23  ;;  %p299_p11 = scmp.eq.s32.totalorder %s298_s13, 0 }
  0x1d   : > { %p1880_p12 = scmp.eq.s32.totalorder %s1399_s16, 0  ;;  %p1439_p13 = pneg %p1876_p10 }
  0x1e   : > { %s1887_s17 = scalar_select %p299_p11, %s1711_s27, %s301_s20  }
  0x1f   : > { %p1891_p0 = pnand %p1880_p12, %p1439_p13  ;;  %s2155_s4 = sld [smem:[#allocation26_spill]] }
  0x20   : > { %2153 = sst [smem:[#allocation25_spill]] %s1887_s17  ;;  %s1733_s16 = smov [#allocation7]  }
  0x21   : > { %s358_s19 = sshll.u32 %s1733_s16, 4  ;;  %s1734_s14 = smov 128   ;;  %s359_s19 = int_to_ptr.vmem [resolvable:$true] %s358_s19 }
  0x22   : > { %s1735_s25 = smov 8   ;;  %s336_s27 = sshll.u32 %s2112_s1, 4  ;;  %s337_s27 = int_to_ptr.hbm [resolvable:$true] %s336_s27 }
  0x23   : > { %s1736_s15 = smov [#allocation4]   ;;  %s1737_s16 = smov [#allocation9]  }
  0x24   : > { %s338_s22 = sshll.u32 %s1736_s15, 4  ;;  %s378_s12 = sshll.u32 %s1737_s16, 4  ;;  %s339_s22 = int_to_ptr.vmem [resolvable:$true] %s338_s22  ;;  %s379_s12 = int_to_ptr.vmem [resolvable:$true] %s378_s12 }
  0x25   : > { %s356_s13 = sshll.u32 %s2155_s4, 4  ;;  %s376_s4 = sshll.u32 %s2118_s7, 4  ;;  %s357_s13 = int_to_ptr.hbm [resolvable:$true] %s356_s13  ;;  %s377_s4 = int_to_ptr.hbm [resolvable:$true] %s376_s4 }
  0x26   : > { %1445 = dma.hbm_to_vmem [thread:$0]  (!%p1891_p0), %s357_s13, 10240, %s359_s19, [#allocation8], %s1734_s14, %s1734_s14, %s1735_s25  }
  0x27   : > { %1442 = dma.hbm_to_vmem [thread:$0]  (!%p1891_p0), %s337_s27, 10240, %s339_s22, [#allocation5], %s1734_s14, %s1734_s14, %s1735_s25  }
  0x28   : > { %1448 = dma.hbm_to_vmem [thread:$0]  (!%p1891_p0), %s377_s4, 10240, %s379_s12, [#allocation8], %s1734_s14, %s1734_s14, %s1735_s25  }
  0x29   : > { %409 = sbr.rel (%p1876_p10) target bundleno = 585 (0x249), region = 68 }
  0x2e   : > { %1688 = dma.done.wait (%p1880_p12), [#allocation5], 10240  }
  0x2f   : > { %1690 = vsyncadd (%p1880_p12), [#allocation5], 4294957056 }
  0x30   : > { %1692 = dma.done.wait (%p1880_p12), [#allocation8], 20480  }
  0x31   : > { %1694 = vsyncadd (%p1880_p12), [#allocation8], 4294946816  ;;  %s454_s4 = sand.u32 1, %s1707_s26   ;;  %s1410_s12 = sshll.u32 %s1715_s28, 3 }
  0x32   : > { %s1924_s25 = sshll.u32 %s454_s4, 3  ;;  %s458_s27 = smul.u32 40, %s1719_s29 }
  0x33   : > { %s456_s30 = scalar_lea.vmem [#allocation10], %s1924_s25 }
  0x34   : > { %s459_s14 = sadd.s32 %s1410_s12, %s458_s27 }
  0x35   : > { %s460_s19 = scalar_lea.vmem %s2111_s0, %s459_s14 }
  0x36   : > { %v473_v0 = vld [vmem:[%s460_s19] sm:$0xff]  ;;  %v475_v1 = vld [vmem:[%s460_s19 + $0x8] sm:$0xff]  ;;  %v1411_v2 = vld [vmem:[%s460_s19 + $0x10] sm:$0xf] }
  0x37   : > { %474 = vst [vmem:[#allocation2] sm:$0xff] %v473_v0 }
  0x38   : > { %476 = vst [vmem:[#allocation2 + $0x8] sm:$0xff] %v475_v1 }
  0x39   : > { %488 = vst [vmem:[#allocation2 + $0x10] sm:$0xf] %v1411_v2 }
  0x3a   : > { %492 = vsyncadd [#allocation3], 320 }
  0x3b   : > { %1695 = dma.done.wait [#allocation3], 320 }
  0x3c   : > { %1696 = vsyncadd [#allocation3], 4294966976  ;;  %v550_v3 = vld [vmem:[#allocation4 + $0x78] sm:$0xff]  ;;  %v549_v4 = vld [vmem:[#allocation4 + $0x70] sm:$0xff]  ;;  %vm511_vm0 = vcmask 1045504   ;;  %vm519_vm1 = vcmask 1044480  }
  0x3d   : > { %615 = vmatpush.msra.mxu0 %v550_v3  ;;  %v548_v5 = vld [vmem:[#allocation4 + $0x68] sm:$0xff]  ;;  %v582_v6 = vld [vmem:[#allocation4 + $0x178] sm:$0xff]  ;;  %v581_v7 = vld [vmem:[#allocation4 + $0x170] sm:$0xff]  ;;  %vm503_vm2 = vcmask 1046528   ;;  %vm527_vm3 = vcmask 1043456   ;;  %s1424_s18 = smul.u32 3, %s1719_s29 }
  0x3e   : > { %661 = vmatpush.msra.mxu2 %v582_v6  ;;  %v598_v8 = vld [vmem:[#allocation4 + $0x1f8] sm:$0xff]  ;;  %v547_v10 = vld [vmem:[#allocation4 + $0x60] sm:$0xff]  ;;  %v580_v11 = vld [vmem:[#allocation4 + $0x168] sm:$0xff]  ;;  %s2158_s16 = sld [smem:[#allocation27_spill]]  ;;  %s1287_s22 = sshll.u32 %s456_s30, 4  ;;  %s1288_s22 = int_to_ptr.vmem [resolvable:$true] %s1287_s22 }
  0x3f   : > { %616 = vmatpush.msra.mxu0 %v549_v4  ;;  %v566_v9 = vld [vmem:[#allocation4 + $0xf8] sm:$0xff]  ;;  %684 = vmatpush.msra.mxu3 %v598_v8  ;;  %v597_v12 = vld [vmem:[#allocation4 + $0x1f0] sm:$0xff]  ;;  %v596_v14 = vld [vmem:[#allocation4 + $0x1e8] sm:$0xff]  ;;  %s1283_s13 = sadd.s32 %s1715_s28, %s1424_s18  ;;  %s2160_s15 = sld [smem:[#allocation28_spill]] }
  0x40   : > { %638 = vmatpush.msra.mxu1 %v566_v9  ;;  %662 = vmatpush.msra.mxu2 %v581_v7  ;;  %v565_v13 = vld [vmem:[#allocation4 + $0xf0] sm:$0xff]  ;;  %v546_v15 = vld [vmem:[#allocation4 + $0x58] sm:$0xff]  ;;  %v579_v16 = vld [vmem:[#allocation4 + $0x160] sm:$0xff]  ;;  %s1273_s17 = scalar_lea.sflag [#allocation6], %s454_s4 }
  0x41   : > { %617 = vmatpush.msra.mxu0 %v548_v5  ;;  %685 = vmatpush.msra.mxu3 %v597_v12  ;;  %v564_v17 = vld [vmem:[#allocation4 + $0xe8] sm:$0xff]  ;;  %v595_v18 = vld [vmem:[#allocation4 + $0x1e0] sm:$0xff]  ;;  %v545_v20 = vld [vmem:[#allocation4 + $0x50] sm:$0xff] }
  0x42   : > { %639 = vmatpush.msra.mxu1 %v565_v13  ;;  %663 = vmatpush.msra.mxu2 %v580_v11  ;;  %v563_v19 = vld [vmem:[#allocation4 + $0xe0] sm:$0xff]  ;;  %v578_v21 = vld [vmem:[#allocation4 + $0x158] sm:$0xff]  ;;  %v544_v24 = vld [vmem:[#allocation4 + $0x48] sm:$0xff] }
  0x43   : > { %618 = vmatpush.msra.mxu0 %v547_v10  ;;  %686 = vmatpush.msra.mxu3 %v596_v14  ;;  %v594_v22 = vld [vmem:[#allocation4 + $0x1d8] sm:$0xff]  ;;  %v577_v25 = vld [vmem:[#allocation4 + $0x150] sm:$0xff]  ;;  %v543_v28 = vld [vmem:[#allocation4 + $0x40] sm:$0xff] }
  0x44   : > { %640 = vmatpush.msra.mxu1 %v564_v17  ;;  %664 = vmatpush.msra.mxu2 %v579_v16  ;;  %v562_v23 = vld [vmem:[#allocation4 + $0xd8] sm:$0xff]  ;;  %v593_v26 = vld [vmem:[#allocation4 + $0x1d0] sm:$0xff]  ;;  %v576_v29 = vld [vmem:[#allocation4 + $0x148] sm:$0xff] }
  0x45   : > { %619 = vmatpush.msra.mxu0 %v546_v15  ;;  %687 = vmatpush.msra.mxu3 %v595_v18  ;;  %v561_v27 = vld [vmem:[#allocation4 + $0xd0] sm:$0xff]  ;;  %v592_v30 = vld [vmem:[#allocation4 + $0x1c8] sm:$0xff]  ;;  %v542_v32 = vld [vmem:[#allocation4 + $0x38] sm:$0xff]  ;;  %s2161_s18 = smov %s2160_s15 }
  0x46   : > { %641 = vmatpush.msra.mxu1 %v563_v19  ;;  %665 = vmatpush.msra.mxu2 %v578_v21  ;;  %v560_v31 = vld [vmem:[#allocation4 + $0xc8] sm:$0xff]  ;;  %v575_v33 = vld [vmem:[#allocation4 + $0x140] sm:$0xff]  ;;  %v541_v36 = vld [vmem:[#allocation4 + $0x30] sm:$0xff]  ;;  %s1647_s24 = scalar_lea.hbm %s2161_s18, 48 }
  0x47   : > { %620 = vmatpush.msra.mxu0 %v545_v20  ;;  %688 = vmatpush.msra.mxu3 %v594_v22  ;;  %v591_v34 = vld [vmem:[#allocation4 + $0x1c0] sm:$0xff]  ;;  %v574_v37 = vld [vmem:[#allocation4 + $0x138] sm:$0xff]  ;;  %v540_v40 = vld [vmem:[#allocation4 + $0x28] sm:$0xff] }
  0x48   : > { %642 = vmatpush.msra.mxu1 %v562_v23  ;;  %666 = vmatpush.msra.mxu2 %v577_v25  ;;  %v559_v35 = vld [vmem:[#allocation4 + $0xc0] sm:$0xff]  ;;  %v590_v38 = vld [vmem:[#allocation4 + $0x1b8] sm:$0xff]  ;;  %v573_v41 = vld [vmem:[#allocation4 + $0x130] sm:$0xff] }
  0x49   : > { %621 = vmatpush.msra.mxu0 %v544_v24  ;;  %689 = vmatpush.msra.mxu3 %v593_v26  ;;  %v558_v39 = vld [vmem:[#allocation4 + $0xb8] sm:$0xff]  ;;  %v589_v42 = vld [vmem:[#allocation4 + $0x1b0] sm:$0xff]  ;;  %v539_v44 = vld [vmem:[#allocation4 + $0x20] sm:$0xff] }
  0x4a   : > { %643 = vmatpush.msra.mxu1 %v561_v27  ;;  %667 = vmatpush.msra.mxu2 %v576_v29  ;;  %v557_v43 = vld [vmem:[#allocation4 + $0xb0] sm:$0xff]  ;;  %v572_v45 = vld [vmem:[#allocation4 + $0x128] sm:$0xff]  ;;  %v538_v48 = vld [vmem:[#allocation4 + $0x18] sm:$0xff] }
  0x4b   : > { %622 = vmatpush.msra.mxu0 %v543_v28  ;;  %690 = vmatpush.msra.mxu3 %v592_v30  ;;  %v588_v46 = vld [vmem:[#allocation4 + $0x1a8] sm:$0xff]  ;;  %v571_v49 = vld [vmem:[#allocation4 + $0x120] sm:$0xff]  ;;  %v537_v50 = vld [vmem:[#allocation4 + $0x10] sm:$0xff] }
  0x4c   : > { %644 = vmatpush.msra.mxu1 %v560_v31  ;;  %668 = vmatpush.msra.mxu2 %v575_v33  ;;  %v556_v47 = vld [vmem:[#allocation4 + $0xa8] sm:$0xff]  ;;  %v587_v51 = vld [vmem:[#allocation4 + $0x1a0] sm:$0xff]  ;;  %v570_v54 = vld [vmem:[#allocation4 + $0x118] sm:$0xff] }
  0x4d   : > { %623 = vmatpush.msra.mxu0 %v542_v32  ;;  %691 = vmatpush.msra.mxu3 %v591_v34  ;;  %v555_v52 = vld [vmem:[#allocation4 + $0xa0] sm:$0xff]  ;;  %v536_v53 = vld [vmem:[#allocation4 + $0x8] sm:$0xff]  ;;  %v1935_v56 = vld [vmem:[#allocation2 + $0x8] sm:$0xff] }
  0x4e   : > { %645 = vmatpush.msra.mxu1 %v559_v35  ;;  %669 = vmatpush.msra.mxu2 %v574_v37  ;;  %v1933_v55 = vld [vmem:[#allocation2] sm:$0xff]  ;;  %v569_v57 = vld [vmem:[#allocation4 + $0x110] sm:$0xff]  ;;  %v586_v58 = vld [vmem:[#allocation4 + $0x198] sm:$0xff]  ;;  %v513_v2 = vrot.slane %v1935_v56, 2  ;;  %v521_v7 = vrot.slane %v1935_v56, 3  ;;  %v505_v9 = vrot.slane %v1935_v56, 1 }
  0x4f   : > { %624 = vmatpush.msra.mxu0 %v541_v36  ;;  %692 = vmatpush.msra.mxu3 %v590_v38  ;;  %v554_v59 = vld [vmem:[#allocation4 + $0x98] sm:$0xff]  ;;  %v535_v60 = vld [vmem:[#allocation4] sm:$0xff]  ;;  %v568_v61 = vld [vmem:[#allocation4 + $0x108] sm:$0xff]  ;;  %v512_v1 = vrot.slane %v1933_v55, 2  ;;  %v520_v6 = vrot.slane %v1933_v55, 3  ;;  %v504_v8 = vrot.slane %v1933_v55, 1 }
  0x50   : > { %646 = vmatpush.msra.mxu1 %v558_v39  ;;  %670 = vmatpush.msra.mxu2 %v573_v41  ;;  %v585_v62 = vld [vmem:[#allocation4 + $0x190] sm:$0xff]  ;;  %v614_v0 = vld [vmem:[#allocation4 + $0x278] sm:$0xff]  ;;  %v567_v3 = vld [vmem:[#allocation4 + $0x100] sm:$0xff] }
  0x51   : > { %625 = vmatpush.msra.mxu0 %v540_v40  ;;  %693 = vmatpush.msra.mxu3 %v589_v42  ;;  %v553_v63 = vld [vmem:[#allocation4 + $0x90] sm:$0xff]  ;;  %v584_v4 = vld [vmem:[#allocation4 + $0x188] sm:$0xff]  ;;  %v514_v11 = vsel %vm511_vm0, %v512_v1, %v513_v2  ;;  %v583_v12 = vld [vmem:[#allocation4 + $0x180] sm:$0xff]  ;;  %v522_v16 = vsel %vm519_vm1, %v520_v6, %v521_v7  ;;  %v506_v17 = vsel %vm503_vm2, %v504_v8, %v505_v9 }
  0x52   : > { %647 = vmatpush.msra.mxu1 %v557_v43  ;;  %671 = vmatpush.msra.mxu2 %v572_v45  ;;  %v552_v5 = vld [vmem:[#allocation4 + $0x88] sm:$0xff]  ;;  %v613_v10 = vld [vmem:[#allocation4 + $0x270] sm:$0xff]  ;;  %v551_v13 = vld [vmem:[#allocation4 + $0x80] sm:$0xff]  ;;  %v529_v45 = vrot.slane %v1935_v56, 4 }
  0x53   : > { %626 = vmatpush.msra.mxu0 %v539_v44  ;;  %694 = vmatpush.msra.mxu3 %v588_v46  ;;  %v1944_v14 = vld [vmem:[#allocation2 + $0x10] sm:$0xf]  ;;  %v612_v15 = vld [vmem:[#allocation4 + $0x268] sm:$0xff]  ;;  %v611_v18 = vld [vmem:[#allocation4 + $0x260] sm:$0xff]  ;;  %v528_v44 = vrot.slane %v1933_v55, 4 }
  0x54   : > { %648 = vmatpush.msra.mxu1 %v556_v47  ;;  %672 = vmatpush.msra.mxu2 %v571_v49  ;;  %v515_v19 = vrot.slane %v1944_v14, 2  ;;  %v610_v20 = vld [vmem:[#allocation4 + $0x258] sm:$0xff]  ;;  %v523_v21 = vrot.slane %v1944_v14, 3  ;;  %v507_v22 = vrot.slane %v1944_v14, 1  ;;  %v609_v23 = vld [vmem:[#allocation4 + $0x250] sm:$0xff]  ;;  %v608_v27 = vld [vmem:[#allocation4 + $0x248] sm:$0xff] }
  0x55   : > { %627 = vmatpush.msra.mxu0 %v538_v48  ;;  %695 = vmatpush.msra.mxu3 %v587_v51  ;;  %v803_v25 = vld [vmem:[#allocation7 + $0x78] sm:$0xff]  ;;  %v802_v26 = vld [vmem:[#allocation7 + $0x70] sm:$0xff]  ;;  %v607_v30 = vld [vmem:[#allocation4 + $0x240] sm:$0xff]  ;;  %v530_v49 = vsel %vm527_vm3, %v528_v44, %v529_v45 }
  0x56   : > { %649 = vmatpush.msra.mxu1 %v555_v52  ;;  %673 = vmatpush.msra.mxu2 %v570_v54  ;;  %v516_v24 = vsel %vm511_vm0, %v513_v2, %v515_v19  ;;  %v524_v28 = vsel %vm519_vm1, %v521_v7, %v523_v21  ;;  %v508_v29 = vsel %vm503_vm2, %v505_v9, %v507_v22  ;;  %v801_v31 = vld [vmem:[#allocation7 + $0x68] sm:$0xff]  ;;  %v606_v32 = vld [vmem:[#allocation4 + $0x238] sm:$0xff]  ;;  %v800_v33 = vld [vmem:[#allocation7 + $0x60] sm:$0xff] }
  0x57   : > { %628 = vmatpush.msra.mxu0 %v537_v50  ;;  %696 = vmatpush.msra.mxu3 %v586_v58  ;;  %v605_v34 = vld [vmem:[#allocation4 + $0x230] sm:$0xff]  ;;  %v799_v35 = vld [vmem:[#allocation7 + $0x58] sm:$0xff]  ;;  %v604_v36 = vld [vmem:[#allocation4 + $0x228] sm:$0xff]  ;;  %v531_v50 = vrot.slane %v1944_v14, 4 }
  0x58   : > { %650 = vmatpush.msra.mxu1 %v554_v59  ;;  %674 = vmatpush.msra.mxu2 %v569_v57  ;;  %v798_v37 = vld [vmem:[#allocation7 + $0x50] sm:$0xff]  ;;  %v603_v38 = vld [vmem:[#allocation4 + $0x220] sm:$0xff]  ;;  %v797_v39 = vld [vmem:[#allocation7 + $0x48] sm:$0xff] }
  0x59   : > { %629 = vmatpush.msra.mxu0 %v536_v53  ;;  %697 = vmatpush.msra.mxu3 %v585_v62  ;;  %v602_v40 = vld [vmem:[#allocation4 + $0x218] sm:$0xff]  ;;  %v796_v41 = vld [vmem:[#allocation7 + $0x40] sm:$0xff]  ;;  %v601_v42 = vld [vmem:[#allocation4 + $0x210] sm:$0xff]  ;;  %v532_v51 = vsel %vm527_vm3, %v529_v45, %v531_v50 }
  0x5a   : > { %651 = vmatpush.msra.mxu1 %v553_v63  ;;  %675 = vmatpush.msra.mxu2 %v568_v61  ;;  %v795_v43 = vld [vmem:[#allocation7 + $0x38] sm:$0xff]  ;;  %v600_v46 = vld [vmem:[#allocation4 + $0x208] sm:$0xff]  ;;  %v794_v47 = vld [vmem:[#allocation7 + $0x30] sm:$0xff] }
  0x5b   : > { %630 = vmatpush.msra.mxu0 %v535_v60  ;;  %698 = vmatpush.msra.mxu3 %v584_v4  ;;  %v599_v48 = vld [vmem:[#allocation4 + $0x200] sm:$0xff]  ;;  %v793_v52 = vld [vmem:[#allocation7 + $0x28] sm:$0xff]  ;;  %v791_v54 = vld [vmem:[#allocation7 + $0x18] sm:$0xff] }
  0x5c   : > { %676 = vmatpush.msra.mxu2 %v567_v3  ;;  %652 = vmatpush.msra.mxu1 %v552_v5  ;;  %v792_v53 = vld [vmem:[#allocation7 + $0x20] sm:$0xff]  ;;  %v835_v57 = vld [vmem:[#allocation7 + $0x178] sm:$0xff]  ;;  %v789_v59 = vld [vmem:[#allocation7 + $0x8] sm:$0xff] }
  0x5d   : > { %707 = vmatpush.msrb.mxu0 %v614_v0  ;;  %677 = vmatmul.f32.vlgmr.msra.gmra.mxu2 %v514_v11  ;;  %v851_v58 = vld [vmem:[#allocation7 + $0x1f8] sm:$0xff]  ;;  %v818_v60 = vld [vmem:[#allocation7 + $0xf0] sm:$0xff]  ;;  %v788_v63 = vld [vmem:[#allocation7] sm:$0xff] }
  0x5e   : > { %699 = vmatpush.msra.mxu3 %v583_v12  ;;  %653 = vmatpush.msra.mxu1 %v551_v13  ;;  %v834_v61 = vld [vmem:[#allocation7 + $0x170] sm:$0xff]  ;;  %v817_v0 = vld [vmem:[#allocation7 + $0xe8] sm:$0xff]  ;;  %v867_v3 = vld [vmem:[#allocation7 + $0x278] sm:$0xff] }
  0x5f   : > { %708 = vmatpush.msrb.mxu0 %v613_v10  ;;  %700 = vmatmul.f32.vlgmr.msra.gmra.mxu3 %v522_v16  ;;  %v850_v62 = vld [vmem:[#allocation7 + $0x1f0] sm:$0xff]  ;;  %v833_v1 = vld [vmem:[#allocation7 + $0x168] sm:$0xff]  ;;  %v816_v4 = vld [vmem:[#allocation7 + $0xe0] sm:$0xff] }
  0x60   : > { %631 = vmatmul.f32.vlgmr.msra.gmra.mxu0 %v1933_v55  ;;  %654 = vmatmul.f32.vlgmr.msra.gmra.mxu1 %v506_v17  ;;  %v790_v55 = vld [vmem:[#allocation7 + $0x10] sm:$0xff]  ;;  %v849_v2 = vld [vmem:[#allocation7 + $0x1e8] sm:$0xff]  ;;  %v832_v5 = vld [vmem:[#allocation7 + $0x160] sm:$0xff] }
  0x61   : > { %709 = vmatpush.msrb.mxu0 %v612_v15  ;;  %868 = vmatpush.msrb.mxu1 %v803_v25  ;;  %v848_v6 = vld [vmem:[#allocation7 + $0x1e0] sm:$0xff]  ;;  %v866_v7 = vld [vmem:[#allocation7 + $0x270] sm:$0xff]  ;;  %v815_v8 = vld [vmem:[#allocation7 + $0xd8] sm:$0xff] }
  0x62   : > { %914 = vmatpush.msrb.mxu3 %v835_v57  ;;  %v831_v9 = vld [vmem:[#allocation7 + $0x158] sm:$0xff]  ;;  %v865_v11 = vld [vmem:[#allocation7 + $0x268] sm:$0xff]  ;;  %v814_v12 = vld [vmem:[#allocation7 + $0xd0] sm:$0xff] }
  0x63   : > { %710 = vmatpush.msrb.mxu0 %v611_v18  ;;  %869 = vmatpush.msrb.mxu1 %v802_v26  ;;  %v847_v10 = vld [vmem:[#allocation7 + $0x1d8] sm:$0xff]  ;;  %v830_v13 = vld [vmem:[#allocation7 + $0x150] sm:$0xff]  ;;  %v864_v15 = vld [vmem:[#allocation7 + $0x260] sm:$0xff] }
  0x64   : > { %915 = vmatpush.msrb.mxu3 %v834_v61  ;;  %v846_v14 = vld [vmem:[#allocation7 + $0x1d0] sm:$0xff]  ;;  %v813_v16 = vld [vmem:[#allocation7 + $0xc8] sm:$0xff]  ;;  %v863_v19 = vld [vmem:[#allocation7 + $0x258] sm:$0xff] }
  0x65   : > { %711 = vmatpush.msrb.mxu0 %v610_v20  ;;  %680 = vmatmul.f32.gmra.mxu2 %v516_v24  ;;  %v829_v17 = vld [vmem:[#allocation7 + $0x148] sm:$0xff]  ;;  %v812_v20 = vld [vmem:[#allocation7 + $0xc0] sm:$0xff]  ;;  %v811_v24 = vld [vmem:[#allocation7 + $0xb8] sm:$0xff] }
  0x66   : > { %870 = vmatpush.msrb.mxu1 %v801_v31  ;;  %916 = vmatpush.msrb.mxu3 %v833_v1  ;;  %v845_v18 = vld [vmem:[#allocation7 + $0x1c8] sm:$0xff]  ;;  %v828_v21 = vld [vmem:[#allocation7 + $0x140] sm:$0xff]  ;;  %v827_v25 = vld [vmem:[#allocation7 + $0x138] sm:$0xff] }
  0x67   : > { %712 = vmatpush.msrb.mxu0 %v609_v23  ;;  %703 = vmatmul.f32.gmra.mxu3 %v524_v28  ;;  %v844_v22 = vld [vmem:[#allocation7 + $0x1c0] sm:$0xff]  ;;  %v862_v23 = vld [vmem:[#allocation7 + $0x250] sm:$0xff]  ;;  %v843_v26 = vld [vmem:[#allocation7 + $0x1b8] sm:$0xff] }
  0x68   : > { %634 = vmatmul.f32.gmra.mxu0 %v1935_v56  ;;  %657 = vmatmul.f32.gmra.mxu1 %v508_v29  ;;  %v819_v56 = vld [vmem:[#allocation7 + $0xf8] sm:$0xff]  ;;  %v810_v28 = vld [vmem:[#allocation7 + $0xb0] sm:$0xff]  ;;  %v860_v31 = vld [vmem:[#allocation7 + $0x240] sm:$0xff] }
  0x69   : > { %713 = vmatpush.msrb.mxu0 %v608_v27  ;;  %871 = vmatpush.msrb.mxu1 %v800_v33  ;;  %v861_v27 = vld [vmem:[#allocation7 + $0x248] sm:$0xff]  ;;  %v826_v29 = vld [vmem:[#allocation7 + $0x130] sm:$0xff]  ;;  %v836_v57 = vld [vmem:[#allocation7 + $0x180] sm:$0xff] }
  0x6a   : > { %891 = vmatpush.msrb.mxu2 %v819_v56  ;;  %917 = vmatpush.msrb.mxu3 %v832_v5  ;;  %v825_v33 = vld [vmem:[#allocation7 + $0x128] sm:$0xff]  ;;  %v806_v45 = vld [vmem:[#allocation7 + $0x90] sm:$0xff]  ;;  %v746_v56 = vlaneseq }
  0x6b   : > { %714 = vmatpush.msrb.mxu0 %v607_v30  ;;  %872 = vmatpush.msrb.mxu1 %v799_v35  ;;  %v842_v30 = vld [vmem:[#allocation7 + $0x1b0] sm:$0xff]  ;;  %v857_v44 = vld [vmem:[#allocation7 + $0x228] sm:$0xff] }
  0x6c   : > { %892 = vmatpush.msrb.mxu2 %v818_v60  ;;  %918 = vmatpush.msrb.mxu3 %v831_v9  ;;  %v805_v50 = vld [vmem:[#allocation7 + $0x88] sm:$0xff] }
  0x6d   : > { %715 = vmatpush.msrb.mxu0 %v606_v32  ;;  %873 = vmatpush.msrb.mxu1 %v798_v37  ;;  %v809_v32 = vld [vmem:[#allocation7 + $0xa8] sm:$0xff]  ;;  %v808_v37 = vld [vmem:[#allocation7 + $0xa0] sm:$0xff] }
  0x6e   : > { %893 = vmatpush.msrb.mxu2 %v817_v0  ;;  %919 = vmatpush.msrb.mxu3 %v830_v13  ;;  %v747_v0 = vshrl.u32 %v746_v56, 7 }
  0x6f   : > { %716 = vmatpush.msrb.mxu0 %v605_v34  ;;  %874 = vmatpush.msrb.mxu1 %v797_v39  ;;  %v841_v34 = vld [vmem:[#allocation7 + $0x1a8] sm:$0xff]  ;;  %v840_v39 = vld [vmem:[#allocation7 + $0x1a0] sm:$0xff] }
  0x70   : > { %894 = vmatpush.msrb.mxu2 %v816_v4  ;;  %920 = vmatpush.msrb.mxu3 %v829_v17  ;;  %v1046_v17 = vld [vmem:[#allocation9 + $0x78] sm:$0xff] }
  0x71   : > { %717 = vmatpush.msrb.mxu0 %v604_v36  ;;  %875 = vmatpush.msrb.mxu1 %v796_v41  ;;  %v859_v36 = vld [vmem:[#allocation7 + $0x238] sm:$0xff] }
  0x72   : > { %895 = vmatpush.msrb.mxu2 %v815_v8  ;;  %921 = vmatpush.msrb.mxu3 %v828_v21  ;;  %v807_v41 = vld [vmem:[#allocation7 + $0x98] sm:$0xff]  ;;  %v1529_v8 = vld [vmem:[%s2113_s2] ss:$0 sm:$0xff] }
  0x73   : > { %718 = vmatpush.msrb.mxu0 %v603_v38  ;;  %876 = vmatpush.msrb.mxu1 %v795_v43  ;;  %v824_v38 = vld [vmem:[#allocation7 + $0x120] sm:$0xff]  ;;  %v839_v43 = vld [vmem:[#allocation7 + $0x198] sm:$0xff] }
  0x74   : > { %896 = vmatpush.msrb.mxu2 %v814_v12  ;;  %922 = vmatpush.msrb.mxu3 %v827_v25  ;;  %v1530_v12 = vld [vmem:[%s2114_s3] ss:$0 sm:$0xff] }
  0x75   : > { %719 = vmatpush.msrb.mxu0 %v602_v40  ;;  %877 = vmatpush.msrb.mxu1 %v794_v47  ;;  %v858_v40 = vld [vmem:[#allocation7 + $0x230] sm:$0xff]  ;;  %v1060_v25 = vld [vmem:[#allocation9 + $0xe8] sm:$0xff] }
  0x76   : > { %897 = vmatpush.msrb.mxu2 %v813_v16  ;;  %923 = vmatpush.msrb.mxu3 %v826_v29  ;;  %v838_v47 = vld [vmem:[#allocation7 + $0x190] sm:$0xff] }
  0x77   : > { %720 = vmatpush.msrb.mxu0 %v601_v42  ;;  %878 = vmatpush.msrb.mxu1 %v793_v52  ;;  %v823_v42 = vld [vmem:[#allocation7 + $0x118] sm:$0xff]  ;;  %v837_v52 = vld [vmem:[#allocation7 + $0x188] sm:$0xff] }
  0x78   : > { %898 = vmatpush.msrb.mxu2 %v812_v20  ;;  %924 = vmatpush.msrb.mxu3 %v825_v33  ;;  %v1062_v20 = vld [vmem:[#allocation9 + $0xf8] sm:$0xff] }
  0x79   : > { %721 = vmatpush.msrb.mxu0 %v600_v46  ;;  %879 = vmatpush.msrb.mxu1 %v792_v53  ;;  %v822_v46 = vld [vmem:[#allocation7 + $0x110] sm:$0xff]  ;;  %v855_v53 = vld [vmem:[#allocation7 + $0x218] sm:$0xff] }
  0x7a   : > { %899 = vmatpush.msrb.mxu2 %v811_v24  ;;  %925 = vmatpush.msrb.mxu3 %v824_v38  ;;  %v1061_v24 = vld [vmem:[#allocation9 + $0xf0] sm:$0xff] }
  0x7b   : > { %722 = vmatpush.msrb.mxu0 %v599_v48  ;;  %880 = vmatpush.msrb.mxu1 %v791_v54  ;;  %v856_v48 = vld [vmem:[#allocation7 + $0x220] sm:$0xff] }
  0x7c   : > { %723 = vmatmul.f32.vlgmr.msrb.gmra.mxu0 %v530_v49  ;;  %900 = vmatpush.msrb.mxu2 %v810_v28  ;;  %v804_v54 = vld [vmem:[#allocation7 + $0x80] sm:$0xff] }
  0x7d   : > { %881 = vmatpush.msrb.mxu1 %v790_v55  ;;  %937 = vmatpush.msra.mxu0 %v851_v58  ;;  %v820_v55 = vld [vmem:[#allocation7 + $0x100] sm:$0xff]  ;;  %v854_v58 = vld [vmem:[#allocation7 + $0x210] sm:$0xff] }
  0x7e   : > { %901 = vmatpush.msrb.mxu2 %v809_v32  ;;  %926 = vmatpush.msrb.mxu3 %v823_v42  ;;  %v1043_v28 = vld [vmem:[#allocation9 + $0x60] sm:$0xff] }
  0x7f   : > { %882 = vmatpush.msrb.mxu1 %v789_v59  ;;  %938 = vmatpush.msra.mxu0 %v850_v62  ;;  %v853_v62 = vld [vmem:[#allocation7 + $0x208] sm:$0xff] }
  0x80   : > { %902 = vmatpush.msrb.mxu2 %v808_v37  ;;  %927 = vmatpush.msrb.mxu3 %v822_v46  ;;  %v1041_v37 = vld [vmem:[#allocation9 + $0x50] sm:$0xff] }
  0x81   : > { %883 = vmatpush.msrb.mxu1 %v788_v63  ;;  %939 = vmatpush.msra.mxu0 %v849_v2  ;;  %v852_v63 = vld [vmem:[#allocation7 + $0x200] sm:$0xff]  ;;  %v749_v2 = vstv %s1410_s12  ;;  %s1420_s12 = sshll.u32 %s1283_s13, 3 }
  0x82   : > { %903 = vmatpush.msrb.mxu2 %v807_v41  ;;  %v1963_v5 = vadd.s32 %v749_v2, %v747_v0  ;;  %v1039_v41 = vld [vmem:[#allocation9 + $0x40] sm:$0xff]  ;;  %s1285_s19 = scalar_lea.hbm %s2160_s15, %s1420_s12 }
  0x83   : > { %960 = vmatpush.msra.mxu1 %v867_v3  ;;  %940 = vmatpush.msra.mxu0 %v848_v6  ;;  %s1289_s23 = sshll.u32 %s1285_s19, 4  ;;  %s1290_s23 = int_to_ptr.hbm [resolvable:$true] %s1289_s23 }
  0x84   : > { %726 = vmatmul.f32.gmra.mxu0 %v532_v51  ;;  %904 = vmatpush.msrb.mxu2 %v806_v45  ;;  %v821_v51 = vld [vmem:[#allocation7 + $0x108] sm:$0xff]  ;;  %v1412_v13 = vadd.s32 4294967292, %v1963_v5  ;;  %s1641_s13 = sshra.s32 %s1290_s23, 4  ;;  %s1642_s13 = int_to_ptr.hbm [resolvable:$true] %s1641_s13 }
  0x85   : > { %961 = vmatpush.msra.mxu1 %v866_v7  ;;  %941 = vmatpush.msra.mxu0 %v847_v10  ;;  %s1643_s20 = scalar_lea.hbm %s1642_s13, 8  ;;  %p1648_p5 = scmp.lt.s32.totalorder %s1642_s13, %s2161_s18 }
  0x86   : > { %905 = vmatpush.msrb.mxu2 %v805_v50  ;;  %928 = vmatpush.msrb.mxu3 %v821_v51  ;;  %vm754_vm4 = vcmp.ge.s32.totalorder %v1412_v13, 0  ;;  %vm756_vm5 = vcmp.lt.s32.totalorder %v1412_v13, 20  ;;  %v1050_v13 = vld [vmem:[#allocation9 + $0x98] sm:$0xff]  ;;  %p1644_p1 = scmp.ne.s32.totalorder %s1642_s13, %s1643_s20  ;;  %p1649_p6 = scmp.lt.s32.totalorder %s1647_s24, %s1643_s20 }
  0x87   : > { %962 = vmatpush.msra.mxu1 %v865_v11  ;;  %942 = vmatpush.msra.mxu0 %v846_v14  ;;  %v748_v14 = vadd.s32 8, %v747_v0  ;;  %vm1974_vm6 = vmand %vm754_vm4, %vm756_vm5  ;;  %v1055_v0 = vld [vmem:[#allocation9 + $0xc0] sm:$0xff] }
  0x88   : > { %906 = vmatpush.msrb.mxu2 %v804_v54  ;;  %929 = vmatpush.msrb.mxu3 %v820_v55  ;;  %p1645_p2 = pnand %p1644_p1, %p1860_p3  ;;  %p1650_p7 = por %p1649_p6, %p1648_p5 }
  0x89   : > { %963 = vmatpush.msra.mxu1 %v864_v15  ;;  %943 = vmatpush.msra.mxu0 %v845_v18  ;;  %v1045_v18 = vld [vmem:[#allocation9 + $0x70] sm:$0xff] }
  0x8a   : > { %1111 = vmatpush.msra.mxu2 %v1046_v17  ;;  %1131 = vmatpush.msra.mxu3 %v1062_v20  ;;  %v1049_v17 = vld [vmem:[#allocation9 + $0x90] sm:$0xff]  ;;  %v1108_v20 = vld [vmem:[#allocation9 + $0x268] sm:$0xff]  ;;  %p1646_p4 = pneg %p1645_p2 }
  0x8b   : > { %964 = vmatpush.msra.mxu1 %v863_v19  ;;  %944 = vmatpush.msra.mxu0 %v844_v22  ;;  %v1972_v22 = vadd.s32 %v749_v2, %v748_v14  ;;  %v1054_v2 = vld [vmem:[#allocation9 + $0xb8] sm:$0xff]  ;;  %v1077_v14 = vld [vmem:[#allocation9 + $0x170] sm:$0xff] }
  0x8c   : > { %1112 = vmatpush.msra.mxu2 %v1045_v18  ;;  %1132 = vmatpush.msra.mxu3 %v1061_v24  ;;  %v1076_v18 = vld [vmem:[#allocation9 + $0x168] sm:$0xff]  ;;  %v1091_v24 = vld [vmem:[#allocation9 + $0x1e0] sm:$0xff]  ;;  %p1651_p9 = pnand %p1650_p7, %p1646_p4 }
  0x8d   : > { %965 = vmatpush.msra.mxu1 %v862_v23  ;;  %945 = vmatpush.msra.mxu0 %v843_v26  ;;  %v1044_v23 = vld [vmem:[#allocation9 + $0x68] sm:$0xff] }
  0x8e   : > { %1113 = vmatpush.msra.mxu2 %v1044_v23  ;;  %1133 = vmatpush.msra.mxu3 %v1060_v25  ;;  %v1075_v23 = vld [vmem:[#allocation9 + $0x160] sm:$0xff] }
  0x8f   : > { %966 = vmatpush.msra.mxu1 %v861_v27  ;;  %946 = vmatpush.msra.mxu0 %v842_v30  ;;  %v1107_v25 = vld [vmem:[#allocation9 + $0x260] sm:$0xff] }
  0x90   : > { %1114 = vmatpush.msra.mxu2 %v1043_v28  ;;  %v1090_v28 = vld [vmem:[#allocation9 + $0x1d8] sm:$0xff]  ;;  %v1237_v30 = vld [vmem:[%s2121_s10 + $0x78] sm:$0xff] }
  0x91   : > { %967 = vmatpush.msra.mxu1 %v860_v31  ;;  %947 = vmatpush.msra.mxu0 %v841_v34  ;;  %v1059_v31 = vld [vmem:[#allocation9 + $0xe0] sm:$0xff]  ;;  %v1413_v34 = vadd.s32 4294967292, %v1972_v22 }
  0x92   : > { %1134 = vmatpush.msra.mxu3 %v1059_v31  ;;  %v1073_v31 = vld [vmem:[#allocation9 + $0x150] sm:$0xff] }
  0x93   : > { %968 = vmatpush.msra.mxu1 %v859_v36  ;;  %948 = vmatpush.msra.mxu0 %v840_v39  ;;  %vm755_vm7 = vcmp.ge.s32.totalorder %v1413_v34, 0  ;;  %vm757_vm8 = vcmp.lt.s32.totalorder %v1413_v34, 20  ;;  %v1040_v39 = vld [vmem:[#allocation9 + $0x48] sm:$0xff]  ;;  %v1236_v34 = vld [vmem:[%s2121_s10 + $0x70] sm:$0xff] }
  0x94   : > { %vm759_vm9 = vmand %vm755_vm7, %vm757_vm8 }
  0x95   : > { %969 = vmatpush.msra.mxu1 %v858_v40  ;;  %949 = vmatpush.msra.mxu0 %v839_v43 }
  0x97   : > { %970 = vmatpush.msra.mxu1 %v857_v44  ;;  %950 = vmatpush.msra.mxu0 %v838_v47 }
  0x99   : > { %971 = vmatpush.msra.mxu1 %v856_v48  ;;  %951 = vmatpush.msra.mxu0 %v837_v52 }
  0x9b   : > { %972 = vmatpush.msra.mxu1 %v855_v53  ;;  %952 = vmatpush.msra.mxu0 %v836_v57  ;;  %v1038_v57 = vld [vmem:[#allocation9 + $0x38] sm:$0xff] }
  0x9d   : > { %973 = vmatpush.msra.mxu1 %v854_v58  ;;  %v1058_v58 = vld [vmem:[#allocation9 + $0xd8] sm:$0xff] }
  0x9e   : > { %1135 = vmatpush.msra.mxu3 %v1058_v58  ;;  %v1099_v58 = vld [vmem:[#allocation9 + $0x220] sm:$0xff] }
  0x9f   : > { %974 = vmatpush.msra.mxu1 %v853_v62  ;;  %v1056_v62 = vld [vmem:[#allocation9 + $0xc8] sm:$0xff] }
  0xa1   : > { %975 = vmatpush.msra.mxu1 %v852_v63  ;;  %v1035_v63 = vld [vmem:[#allocation9 + $0x20] sm:$0xff] }
  0xdd   : > { %v632_v35 = vpop.f32.mrf.mxu0  ;;  %v655_v49 = vpop.f32.mrf.mxu1 }
  0xde   : > { %v656_v61 = vadd.f32 %v655_v49, %v632_v35  ;;  %v1042_v35 = vld [vmem:[#allocation9 + $0x58] sm:$0xff] }
  0xdf   : > { %1115 = vmatpush.msra.mxu2 %v1042_v35  ;;  %v1072_v35 = vld [vmem:[#allocation9 + $0x148] sm:$0xff] }
  0xe0   : > { %v678_v59 = vpop.f32.mrf.mxu2 }
  0xe1   : > { %v679_v3 = vadd.f32 %v678_v59, %v656_v61  ;;  %1116 = vmatpush.msra.mxu2 %v1041_v37  ;;  %v1037_v59 = vld [vmem:[#allocation9 + $0x30] sm:$0xff]  ;;  %v1036_v61 = vld [vmem:[#allocation9 + $0x28] sm:$0xff] }
  0xe2   : > { %v701_v1 = vpop.f32.mrf.mxu3  ;;  %v1104_v37 = vld [vmem:[#allocation9 + $0x248] sm:$0xff] }
  0xe3   : > { %v702_v6 = vadd.f32 %v701_v1, %v679_v3  ;;  %1117 = vmatpush.msra.mxu2 %v1040_v39  ;;  %v1034_v1 = vld [vmem:[#allocation9 + $0x18] sm:$0xff]  ;;  %v1033_v3 = vld [vmem:[#allocation9 + $0x10] sm:$0xff]  ;;  %v1071_v39 = vld [vmem:[#allocation9 + $0x140] sm:$0xff] }
  0xe5   : > { %v635_v60 = vpop.f32.mrf.mxu0  ;;  %v658_v4 = vpop.f32.mrf.mxu1  ;;  %1118 = vmatpush.msra.mxu2 %v1039_v41  ;;  %v1103_v41 = vld [vmem:[#allocation9 + $0x240] sm:$0xff] }
  0xe6   : > { %v659_v7 = vadd.f32 %v658_v4, %v635_v60  ;;  %v1057_v60 = vld [vmem:[#allocation9 + $0xd0] sm:$0xff] }
  0xe7   : > { %1119 = vmatpush.msra.mxu2 %v1038_v57  ;;  %1136 = vmatpush.msra.mxu3 %v1057_v60  ;;  %v1053_v4 = vld [vmem:[#allocation9 + $0xb0] sm:$0xff]  ;;  %v1083_v57 = vld [vmem:[#allocation9 + $0x1a0] sm:$0xff]  ;;  %v1066_v60 = vld [vmem:[#allocation9 + $0x118] sm:$0xff] }
  0xe8   : > { %v681_v9 = vpop.f32.mrf.mxu2 }
  0xe9   : > { %v682_v15 = vadd.f32 %v681_v9, %v659_v7  ;;  %1120 = vmatpush.msra.mxu2 %v1037_v59  ;;  %1137 = vmatpush.msra.mxu3 %v1056_v62  ;;  %v1052_v7 = vld [vmem:[#allocation9 + $0xa8] sm:$0xff]  ;;  %v1051_v9 = vld [vmem:[#allocation9 + $0xa0] sm:$0xff]  ;;  %v1098_v62 = vld [vmem:[#allocation9 + $0x218] sm:$0xff] }
  0xea   : > { %v704_v19 = vpop.f32.mrf.mxu3  ;;  %v1230_v59 = vld [vmem:[%s2121_s10 + $0x40] sm:$0xff] }
  0xeb   : > { %v705_v26 = vadd.f32 %v704_v19, %v682_v15  ;;  %1121 = vmatpush.msra.mxu2 %v1036_v61  ;;  %1138 = vmatpush.msra.mxu3 %v1055_v0  ;;  %v1093_v15 = vld [vmem:[#allocation9 + $0x1f0] sm:$0xff]  ;;  %v1092_v19 = vld [vmem:[#allocation9 + $0x1e8] sm:$0xff]  ;;  %v1082_v61 = vld [vmem:[#allocation9 + $0x198] sm:$0xff] }
  0xec   : > { %v1065_v0 = vld [vmem:[#allocation9 + $0x110] sm:$0xff] }
  0xed   : > { %1122 = vmatpush.msra.mxu2 %v1035_v63  ;;  %1139 = vmatpush.msra.mxu3 %v1054_v2  ;;  %v1229_v63 = vld [vmem:[%s2121_s10 + $0x38] sm:$0xff]  ;;  %v1097_v2 = vld [vmem:[#allocation9 + $0x210] sm:$0xff] }
  0xef   : > { %1123 = vmatpush.msra.mxu2 %v1034_v1  ;;  %1140 = vmatpush.msra.mxu3 %v1053_v4  ;;  %v1081_v1 = vld [vmem:[#allocation9 + $0x190] sm:$0xff]  ;;  %v1064_v4 = vld [vmem:[#allocation9 + $0x108] sm:$0xff] }
  0xf1   : > { %1124 = vmatpush.msra.mxu2 %v1033_v3  ;;  %1141 = vmatpush.msra.mxu3 %v1052_v7  ;;  %v1228_v3 = vld [vmem:[%s2121_s10 + $0x30] sm:$0xff] }
  0xf3   : > { %1142 = vmatpush.msra.mxu3 %v1051_v9  ;;  %v1227_v9 = vld [vmem:[%s2121_s10 + $0x28] sm:$0xff] }
  0xf5   : > { %1143 = vmatpush.msra.mxu3 %v1050_v13  ;;  %v1226_v13 = vld [vmem:[%s2121_s10 + $0x20] sm:$0xff] }
  0xf7   : > { %1144 = vmatpush.msra.mxu3 %v1049_v17 }
  0xf9   : > { %v724_v10 = vpop.f32.mrf.mxu0 }
  0xfa   : > { %v725_v11 = vadd.f32 %v724_v10, %v702_v6  ;;  %v1032_v6 = vld [vmem:[#allocation9 + $0x8] sm:$0xff]  ;;  %v1078_v10 = vld [vmem:[#allocation9 + $0x178] sm:$0xff] }
  0xfb   : > { %1125 = vmatpush.msra.mxu2 %v1032_v6  ;;  %1151 = vmatpush.msrb.mxu0 %v1078_v10  ;;  %v1080_v6 = vld [vmem:[#allocation9 + $0x188] sm:$0xff]  ;;  %v1063_v10 = vld [vmem:[#allocation9 + $0x100] sm:$0xff] }
  0xfc   : > { %v734_v16 = vmul.f32 %v1529_v8, %v725_v11  ;;  %v1094_v11 = vld [vmem:[#allocation9 + $0x1f8] sm:$0xff] }
  0xfd   : > { %1152 = vmatpush.msrb.mxu0 %v1077_v14  ;;  %v1225_v14 = vld [vmem:[%s2121_s10 + $0x18] sm:$0xff] }
  0xfe   : > { %v740_v21 = vadd.f32 %v1530_v12, %v734_v16  ;;  %v1109_v16 = vld [vmem:[#allocation9 + $0x270] sm:$0xff] }
  0xff   : > { %1153 = vmatpush.msrb.mxu0 %v1076_v18 }
 0x100   : > { %v742_v27 = vmax.f32 %v740_v21, 0.0  ;;  %v1048_v21 = vld [vmem:[#allocation9 + $0x88] sm:$0xff] }
 0x101   : > { %v727_v29 = vpop.f32.mrf.mxu0  ;;  %1145 = vmatpush.msra.mxu3 %v1048_v21  ;;  %1154 = vmatpush.msrb.mxu0 %v1075_v23  ;;  %v1222_v23 = vld [vmem:[%s2121_s10] sm:$0xff] }
 0x102   : > { %v744_v32 = vmin.f32 %v742_v27, 20.0  ;;  %v728_v33 = vadd.f32 %v727_v29, %v705_v26  ;;  %v1047_v26 = vld [vmem:[#allocation9 + $0x80] sm:$0xff]  ;;  %v1074_v27 = vld [vmem:[#allocation9 + $0x158] sm:$0xff] }
 0x103   : > { %1146 = vmatpush.msra.mxu3 %v1047_v26  ;;  %v1106_v29 = vld [vmem:[#allocation9 + $0x258] sm:$0xff]  ;;  %1155 = vmatpush.msrb.mxu0 %v1074_v27  ;;  %v1531_v26 = vld [vmem:[%s2116_s5] ss:$0 sm:$0xff] }
 0x104   : > { %v735_v36 = vmul.f32 %v1529_v8, %v728_v33  ;;  %1414 = vmatmul.msk.f32.vlgmr.msrb.gmra.mxu1 %vm1974_vm6, %v744_v32  ;;  %v764_v42 = vsel %vm1974_vm6, %v744_v32, 0.0  ;;  %v1031_v8 = vld [vmem:[#allocation9] sm:$0xff]  ;;  %v1089_v32 = vld [vmem:[#allocation9 + $0x1d0] sm:$0xff] }
 0x105   : > { %v768_v45 = vrot.slane %v764_v42, 1  ;;  %v773_v46 = vrot.slane %v764_v42, 2  ;;  %v778_v50 = vrot.slane %v764_v42, 3  ;;  %v783_v55 = vrot.slane %v764_v42, 4  ;;  %1126 = vmatpush.msra.mxu2 %v1031_v8  ;;  %1171 = vmatpush.msrb.mxu1 %v1094_v11  ;;  %v1105_v33 = vld [vmem:[#allocation9 + $0x250] sm:$0xff]  ;;  %v1234_v42 = vld [vmem:[%s2121_s10 + $0x60] sm:$0xff] }
 0x106   : > { %v741_v38 = vadd.f32 %v1530_v12, %v735_v36  ;;  %v1110_v12 = vld [vmem:[#allocation9 + $0x278] sm:$0xff]  ;;  %1156 = vmatpush.msrb.mxu0 %v1073_v31  ;;  %v1088_v36 = vld [vmem:[#allocation9 + $0x1c8] sm:$0xff]  ;;  %v1079_v11 = vld [vmem:[#allocation9 + $0x180] sm:$0xff] }
 0x107   : > { %1172 = vmatpush.msrb.mxu1 %v1093_v15  ;;  %v1096_v8 = vld [vmem:[#allocation9 + $0x208] sm:$0xff]  ;;  %v1224_v15 = vld [vmem:[%s2121_s10 + $0x10] sm:$0xff] }
 0x108   : > { %v743_v40 = vmax.f32 %v741_v38, 0.0  ;;  %1157 = vmatpush.msrb.mxu0 %v1072_v35  ;;  %v1235_v38 = vld [vmem:[%s2121_s10 + $0x68] sm:$0xff] }
 0x109   : > { %1173 = vmatpush.msrb.mxu1 %v1092_v19  ;;  %v1223_v19 = vld [vmem:[%s2121_s10 + $0x8] sm:$0xff] }
 0x10a   : > { %v745_v43 = vmin.f32 %v743_v40, 20.0  ;;  %v1087_v40 = vld [vmem:[#allocation9 + $0x1c0] sm:$0xff]  ;;  %1158 = vmatpush.msrb.mxu0 %v1071_v39 }
 0x10b   : > { %1174 = vmatpush.msrb.mxu1 %v1091_v24 }
 0x10c   : > { %v765_v44 = vsel %vm759_vm9, %v745_v43, 0.0  ;;  %1415 = vmatmul.msk.f32.gmra.mxu1 %vm759_vm9, %v745_v43  ;;  %v1070_v43 = vld [vmem:[#allocation9 + $0x138] sm:$0xff] }
 0x10d   : > { %v779_v47 = vrot.slane %v765_v44, 3  ;;  %v769_v48 = vrot.slane %v765_v44, 1  ;;  %v774_v49 = vrot.slane %v765_v44, 2  ;;  %v784_v51 = vrot.slane %v765_v44, 4  ;;  %1175 = vmatpush.msrb.mxu1 %v1090_v28  ;;  %v1086_v44 = vld [vmem:[#allocation9 + $0x1b8] sm:$0xff]  ;;  %1159 = vmatpush.msrb.mxu0 %v1070_v43 }
 0x10e   : > { %v1532_v28 = vld [vmem:[%s2117_s6] ss:$0 sm:$0xff] }
 0x10f   : > { %v770_v52 = vsel %vm503_vm2, %v768_v45, %v769_v48  ;;  %v775_v53 = vsel %vm511_vm0, %v773_v46, %v774_v49  ;;  %v780_v54 = vsel %vm519_vm1, %v778_v50, %v779_v47  ;;  %v785_v56 = vsel %vm527_vm3, %v783_v55, %v784_v51  ;;  %1176 = vmatpush.msrb.mxu1 %v1089_v32  ;;  %v1102_v45 = vld [vmem:[#allocation9 + $0x238] sm:$0xff]  ;;  %v1233_v46 = vld [vmem:[%s2121_s10 + $0x58] sm:$0xff]  ;;  %v1101_v50 = vld [vmem:[#allocation9 + $0x230] sm:$0xff] }
 0x110   : > { %907 = vmatmul.f32.vlgmr.msrb.gmra.mxu2 %v770_v52  ;;  %930 = vmatmul.f32.vlgmr.msrb.gmra.mxu3 %v775_v53  ;;  %v1068_v52 = vld [vmem:[#allocation9 + $0x128] sm:$0xff]  ;;  %v1231_v55 = vld [vmem:[%s2121_s10 + $0x48] sm:$0xff] }
 0x111   : > { %953 = vmatmul.f32.vlgmr.msra.gmra.mxu0 %v780_v54  ;;  %1191 = vmatpush.msrb.mxu2 %v1110_v12  ;;  %v1084_v53 = vld [vmem:[#allocation9 + $0x1a8] sm:$0xff]  ;;  %v1095_v12 = vld [vmem:[#allocation9 + $0x200] sm:$0xff] }
 0x112   : > { %1238 = vmatpush.msrb.mxu3 %v1237_v30  ;;  %1177 = vmatpush.msrb.mxu1 %v1088_v36  ;;  %v1100_v54 = vld [vmem:[#allocation9 + $0x228] sm:$0xff] }
 0x113   : > { %1192 = vmatpush.msrb.mxu2 %v1109_v16 }
 0x114   : > { %976 = vmatmul.f32.vlgmr.msra.gmra.mxu1 %v785_v56  ;;  %1239 = vmatpush.msrb.mxu3 %v1236_v34  ;;  %v1067_v56 = vld [vmem:[#allocation9 + $0x120] sm:$0xff] }
 0x115   : > { %1193 = vmatpush.msrb.mxu2 %v1108_v20  ;;  %1178 = vmatpush.msrb.mxu1 %v1087_v40  ;;  %v1417_v40 = vadd.s32 4294967294, %v1972_v22 }
 0x116   : > { %1240 = vmatpush.msrb.mxu3 %v1235_v38 }
 0x117   : > { %1194 = vmatpush.msrb.mxu2 %v1107_v25  ;;  %1179 = vmatpush.msrb.mxu1 %v1086_v44  ;;  %vm1002_vm13 = vcmp.ge.s32.totalorder %v1417_v40, 0  ;;  %vm1004_vm14 = vcmp.lt.s32.totalorder %v1417_v40, 20 }
 0x118   : > { %910 = vmatmul.f32.gmra.mxu2 %v769_v48  ;;  %933 = vmatmul.f32.gmra.mxu3 %v774_v49  ;;  %v1069_v48 = vld [vmem:[#allocation9 + $0x130] sm:$0xff]  ;;  %vm1006_vm15 = vmand %vm1002_vm13, %vm1004_vm14 }
 0x119   : > { %956 = vmatmul.f32.gmra.mxu0 %v779_v47  ;;  %1195 = vmatpush.msrb.mxu2 %v1106_v29  ;;  %v1085_v49 = vld [vmem:[#allocation9 + $0x1b0] sm:$0xff]  ;;  %v1416_v29 = vadd.s32 4294967294, %v1963_v5 }
 0x11a   : > { %1241 = vmatpush.msrb.mxu3 %v1234_v42  ;;  %1160 = vmatpush.msrb.mxu0 %v1069_v48 }
 0x11b   : > { %1196 = vmatpush.msrb.mxu2 %v1105_v33  ;;  %1180 = vmatpush.msrb.mxu1 %v1085_v49  ;;  %vm1001_vm10 = vcmp.ge.s32.totalorder %v1416_v29, 0  ;;  %vm1003_vm11 = vcmp.lt.s32.totalorder %v1416_v29, 20 }
 0x11c   : > { %979 = vmatmul.f32.gmra.mxu1 %v784_v51  ;;  %1242 = vmatpush.msrb.mxu3 %v1233_v46  ;;  %v1232_v51 = vld [vmem:[%s2121_s10 + $0x50] sm:$0xff]  ;;  %vm1005_vm12 = vmand %vm1001_vm10, %vm1003_vm11 }
 0x11d   : > { %1197 = vmatpush.msrb.mxu2 %v1104_v37  ;;  %1161 = vmatpush.msrb.mxu0 %v1068_v52 }
 0x11e   : > { %1243 = vmatpush.msrb.mxu3 %v1232_v51  ;;  %1181 = vmatpush.msrb.mxu1 %v1084_v53 }
 0x11f   : > { %1198 = vmatpush.msrb.mxu2 %v1103_v41  ;;  %1162 = vmatpush.msrb.mxu0 %v1067_v56 }
 0x120   : > { %1244 = vmatpush.msrb.mxu3 %v1231_v55  ;;  %1182 = vmatpush.msrb.mxu1 %v1083_v57 }
 0x121   : > { %1199 = vmatpush.msrb.mxu2 %v1102_v45  ;;  %1163 = vmatpush.msrb.mxu0 %v1066_v60 }
 0x122   : > { %1245 = vmatpush.msrb.mxu3 %v1230_v59  ;;  %1183 = vmatpush.msrb.mxu1 %v1082_v61  ;;  %v1221_v59 = vld [vmem:[#allocation2 + $0x6] sm:$0xff] }
 0x123   : > { %1200 = vmatpush.msrb.mxu2 %v1101_v50  ;;  %1164 = vmatpush.msrb.mxu0 %v1065_v0 }
 0x124   : > { %1246 = vmatpush.msrb.mxu3 %v1229_v63  ;;  %1184 = vmatpush.msrb.mxu1 %v1081_v1 }
 0x125   : > { %1201 = vmatpush.msrb.mxu2 %v1100_v54  ;;  %1165 = vmatpush.msrb.mxu0 %v1064_v4  ;;  %v1535_v4 = vld [vmem:[%s2122_s11] ss:$0 sm:$0xff] }
 0x126   : > { %1247 = vmatpush.msrb.mxu3 %v1228_v3  ;;  %1185 = vmatpush.msrb.mxu1 %v1080_v6  ;;  %v1533_v3 = vld [vmem:[%s2119_s8] ss:$0 sm:$0xff] }
 0x127   : > { %1202 = vmatpush.msrb.mxu2 %v1099_v58  ;;  %1166 = vmatpush.msrb.mxu0 %v1063_v10 }
 0x128   : > { %1248 = vmatpush.msrb.mxu3 %v1227_v9  ;;  %1186 = vmatpush.msrb.mxu1 %v1079_v11  ;;  %v1536_v9 = vld [vmem:[%s2158_s16] ss:$0 sm:$0xff] }
 0x129   : > { %1203 = vmatpush.msrb.mxu2 %v1098_v62 }
 0x12a   : > { %1249 = vmatpush.msrb.mxu3 %v1226_v13 }
 0x12b   : > { %1204 = vmatpush.msrb.mxu2 %v1097_v2 }
 0x12c   : > { %1250 = vmatpush.msrb.mxu3 %v1225_v14 }
 0x12d   : > { %1205 = vmatpush.msrb.mxu2 %v1096_v8  ;;  %v1534_v8 = vld [vmem:[%s2120_s9] ss:$0 sm:$0xff] }
 0x12e   : > { %1251 = vmatpush.msrb.mxu3 %v1224_v15 }
 0x12f   : > { %1206 = vmatpush.msrb.mxu2 %v1095_v12 }
 0x130   : > { %1252 = vmatpush.msrb.mxu3 %v1223_v19 }
 0x132   : > { %1253 = vmatpush.msrb.mxu3 %v1222_v23 }
 0x181   : > { %v2002_v47 = vpop.f32.mrf.mxu1 }
 0x189   : > { %v888_v7 = vpop.f32.mrf.mxu1 }
 0x18e   : > { %v954_v20 = vpop.f32.mrf.mxu0 }
 0x191   : > { %v977_v24 = vpop.f32.mrf.mxu1 }
 0x193   : > { %v908_v16 = vpop.f32.mrf.mxu2  ;;  %v931_v17 = vpop.f32.mrf.mxu3 }
 0x194   : > { %v909_v18 = vadd.f32 %v908_v16, %v2002_v47 }
 0x196   : > { %v932_v21 = vadd.f32 %v931_v17, %v909_v18  ;;  %v957_v36 = vpop.f32.mrf.mxu0 }
 0x198   : > { %v955_v25 = vadd.f32 %v954_v20, %v932_v21 }
 0x199   : > { %v980_v39 = vpop.f32.mrf.mxu1 }
 0x19a   : > { %v978_v27 = vadd.f32 %v977_v24, %v955_v25 }
 0x19b   : > { %v911_v30 = vpop.f32.mrf.mxu2  ;;  %v934_v33 = vpop.f32.mrf.mxu3 }
 0x19c   : > { %v987_v31 = vmul.f32 %v1531_v26, %v978_v27  ;;  %v912_v32 = vadd.f32 %v911_v30, %v888_v7 }
 0x19e   : > { %v993_v34 = vadd.f32 %v1532_v28, %v987_v31  ;;  %v935_v35 = vadd.f32 %v934_v33, %v912_v32 }
 0x1a0   : > { %v995_v37 = vmax.f32 %v993_v34, 0.0  ;;  %v958_v38 = vadd.f32 %v957_v36, %v935_v35 }
 0x1a2   : > { %v981_v41 = vadd.f32 %v980_v39, %v958_v38  ;;  %v997_v42 = vmin.f32 %v995_v37, 20.0 }
 0x1a4   : > { %v988_v43 = vmul.f32 %v1531_v26, %v981_v41  ;;  %1418 = vmatmul.msk.f32.vlgmr.msra.gmra.mxu2 %vm1005_vm12, %v997_v42  ;;  %v1011_v45 = vsel %vm1005_vm12, %v997_v42, 0.0 }
 0x1a5   : > { %v1015_v47 = vrot.slane %v1011_v45, 1  ;;  %v1019_v49 = vrot.slane %v1011_v45, 2  ;;  %v1023_v50 = vrot.slane %v1011_v45, 3  ;;  %v1027_v51 = vrot.slane %v1011_v45, 4 }
 0x1a6   : > { %v994_v5 = vadd.f32 %v1532_v28, %v988_v43 }
 0x1a8   : > { %v996_v44 = vmax.f32 %v994_v5, 0.0 }
 0x1aa   : > { %v998_v46 = vmin.f32 %v996_v44, 20.0 }
 0x1ac   : > { %v1012_v48 = vsel %vm1006_vm15, %v998_v46, 0.0 }
 0x1ad   : > { %v1016_v52 = vrot.slane %v1012_v48, 1  ;;  %v1020_v53 = vrot.slane %v1012_v48, 2  ;;  %v1024_v22 = vrot.slane %v1012_v48, 3  ;;  %v1028_v54 = vrot.slane %v1012_v48, 4 }
 0x1af   : > { %v1017_v55 = vsel %vm503_vm2, %v1015_v47, %v1016_v52  ;;  %v1021_v56 = vsel %vm511_vm0, %v1019_v49, %v1020_v53  ;;  %v1025_v57 = vsel %vm519_vm1, %v1023_v50, %v1024_v22  ;;  %v1029_v58 = vsel %vm527_vm3, %v1027_v51, %v1028_v54 }
 0x1b0   : > { %1147 = vmatmul.f32.vlgmr.msra.gmra.mxu3 %v1017_v55  ;;  %1167 = vmatmul.f32.vlgmr.msrb.gmra.mxu0 %v1021_v56 }
 0x1b1   : > { %1187 = vmatmul.f32.vlgmr.msrb.gmra.mxu1 %v1025_v57  ;;  %1207 = vmatmul.f32.vlgmr.msrb.gmra.mxu2 %v1029_v58 }
 0x1b8   : > { %1254 = vmatmul.f32.vlgmr.msrb.gmra.mxu3 %v1221_v59 }
 0x227   : > { %v1128_v60 = vpop.f32.mrf.mxu2 }
 0x22d   : > { %v1168_v63 = vpop.f32.mrf.mxu0 }
 0x22e   : > { %v1188_v1 = vpop.f32.mrf.mxu1 }
 0x233   : > { %v1148_v61 = vpop.f32.mrf.mxu3 }
 0x234   : > { %v1149_v62 = vadd.f32 %v1148_v61, %v1128_v60  ;;  %v1208_v6 = vpop.f32.mrf.mxu2 }
 0x236   : > { %v1169_v0 = vadd.f32 %v1168_v63, %v1149_v62 }
 0x238   : > { %v1189_v2 = vadd.f32 %v1188_v1, %v1169_v0 }
 0x23a   : > { %v1209_v7 = vadd.f32 %v1208_v6, %v1189_v2 }
 0x23b   : > { %v1255_v10 = vpop.f32.mrf.mxu3 }
 0x23c   : > { %v1215_v11 = vmul.f32 %v1533_v3, %v1209_v7  ;;  %v1262_v12 = vmul.f32 %v1535_v4, %v1255_v10 }
 0x23e   : > { %v1220_v13 = vadd.f32 %v1534_v8, %v1215_v11  ;;  %v1267_v14 = vadd.f32 %v1536_v9, %v1262_v12 }
 0x240   : > { %v1268_v15 = vadd.f32 %v1267_v14, %v1220_v13 }
 0x242   : > { %v1269_v16 = vmax.f32 %v1268_v15, 0.0 }
 0x244   : > { %v1270_v17 = vmin.f32 %v1269_v16, 20.0 }
 0x246   : > { %1271 = vst [vmem:[%s456_s30] sm:$0xff] %v1270_v17 }
 0x247   : > { %1654 = shalt.err (!%p1651_p9)
}
 0x248   : > { %1437 = dma.vmem_to_hbm [thread:$0]  (%p1860_p3), %s1288_s22, 128, %s1290_s23, %s1273_s17  }
 0x249 PF: > { %s2162_s4 = sld [smem:[#allocation20_spill]] }
 0x24a   : > { %s2163_s25 = sld [smem:[#allocation16_spill]] }
 0x24f   : > { %p1459_p10 = scmp.ge.s32.totalorder %s2162_s4, 2 }
 0x250   : > { %s1301_s28 = sand.u32 1, %s2163_s25  }
 0x251   : > { %p1450_p11 = pnand %p1459_p10, %p1869_p8  ;;  %s1302_s14 = scalar_lea.sflag [#allocation6], %s1301_s28 }
 0x253   : > { %p1451_p12 = pneg %p1450_p11 }
 0x255   : > { %1698 = dma.done.wait (%p1451_p12), %s1302_s14, 128  }
 0x256   : > { %1700 = vsyncadd (%p1451_p12), %s1302_s14, 4294967168  ;;  %s28_s15 = sadd.s32 1, %s2162_s4   ;;  %s2165_s19 = sld [smem:[#allocation17_spill]] }
 0x257   : > { %p25_p13 = scmp.ge.s32.totalorder %s28_s15, 8   ;;  %s2166_s27 = sld [smem:[#allocation25_spill]] }
 0x258   : > { %s2167_s28 = sld [smem:[#allocation18_spill]]  ;;  %s2171_s25 = smov %s1707_s26 }
 0x259   : > { %s2168_s29 = sld [smem:[#allocation19_spill]]  ;;  %27 = sbr.rel (!%p25_p13) target bundleno = 11 (0xb), region = 146 }
 0x25a   : > { %s2169_s30 = sld [smem:[#allocation21_spill]] }
 0x25b   : > { %s2170_s14 = sld [smem:[#allocation23_spill]] }
 0x25c   : > { %s2172_s26 = smov %s2165_s19 }
 0x25e   :  { %1308 = vsyncpa [#allocation5], 1 }
 0x25f   :  { %1310 = vsyncpa [#allocation5 + $0x1], 1 }
 0x260   :  { %1311 = vsyncpa [#allocation8], 1 }
 0x261   :  { %1312 = vsyncpa [#allocation6], 1 }
 0x262   :  { %1314 = vsyncpa [#allocation6 + $0x1], 1 }
 0x263   :  { %1315 = vsyncmov [#allocation3] }
 0x266   :  { %s1316_s22 = vpop.sfrf %1315 }
 0x267   :  { %p1423_p3 = scmp.ne.s32.totalorder %s1316_s22, 0 }
 0x269   :  { %1320 = shalt.err (%p1423_p3)  }

</bundles_post_ra>
